<compile_context>
chip_gen: v5e
topology: v5e:2x2
jax: 0.10.0
libtpu: 0.0.40
codegen_flags: <defaults>
</compile_context>

<pallas_src>
import functools

import jax
import jax.numpy as jnp
from jax.experimental import pallas as pl
from jax.experimental.pallas import tpu as pltpu

NUM_GGNN_LAYERS = 5            # GatedGraphConv(num_layers=5) in the module
MLP_HIDDEN = 256               # MLP_hidden_dim default
MLP_INTERNAL = MLP_HIDDEN // 2
NUM_CLASSES = 2
LANE = 128

# Adjacency-matmul tile sizes.  Sweep per generation:
#   v7x: (256, 512)   v6e: (512, 1024)   v5e: (128, 128)
NODE_TILE_M = 128              # rows of A / h handled per grid step
NODE_TILE_K = 128              # source-node (reduction) tile; also used by pooling

VMEM_LIMIT_BYTES = 64 * 1024 * 1024


def _round_up(x, m):
    return (x + m - 1) // m * m


# --------------------------------------------------------------------------------------
# Kernel 1: one GatedGraphConv propagation step + shared GRUCell update, tiled over A.
# --------------------------------------------------------------------------------------
def _ggnn_layer_kernel(a_ref, hsrc_ref, hrow_ref, wl_ref,
                       wir_ref, wiz_ref, win_ref,
                       whr_ref, whz_ref, whn_ref,
                       br_ref, bz_ref, bin_ref, bhn_ref,
                       hnew_ref, m_acc):
    k = pl.program_id(1)

    @pl.when(k == 0)
    def _():
        m_acc[...] = jnp.zeros_like(m_acc)

    # msg_j = h_j @ W_l for this source block, then dense scatter-add:
    # m_i += A[i, j] @ msg_j.  Both matmuls are bf16 inputs -> f32 accumulate.
    msg = jnp.dot(hsrc_ref[...].astype(jnp.bfloat16), wl_ref[...],
                  preferred_element_type=jnp.float32)
    m_acc[...] += jnp.dot(a_ref[...], msg.astype(jnp.bfloat16),
                          preferred_element_type=jnp.float32)

    @pl.when(k == pl.num_programs(1) - 1)
    def _():
        h = hrow_ref[...]                        # f32 hidden state (row block)
        hb = h.astype(jnp.bfloat16)
        m = m_acc[...].astype(jnp.bfloat16)
        # torch.nn.GRUCell, gate order reset | update | new — per-gate matmuls
        # keep every intermediate a lane-dense [tm, Dp] tile.
        r = jax.nn.sigmoid(
            jnp.dot(m, wir_ref[...], preferred_element_type=jnp.float32)
            + jnp.dot(hb, whr_ref[...], preferred_element_type=jnp.float32)
            + br_ref[...])
        z = jax.nn.sigmoid(
            jnp.dot(m, wiz_ref[...], preferred_element_type=jnp.float32)
            + jnp.dot(hb, whz_ref[...], preferred_element_type=jnp.float32)
            + bz_ref[...])
        n = jnp.tanh(
            jnp.dot(m, win_ref[...], preferred_element_type=jnp.float32) + bin_ref[...]
            + r * (jnp.dot(hb, whn_ref[...], preferred_element_type=jnp.float32)
                   + bhn_ref[...]))
        hnew_ref[...] = (1.0 - z) * n + z * h


def _ggnn_layer(h, a_bf16, w_l, kp, *, tm, tk):
    np_, dp = h.shape
    grid = (np_ // tm, np_ // tk)
    full_sq = pl.BlockSpec((dp, dp), lambda i, k: (0, 0))
    bias = pl.BlockSpec((1, dp), lambda i, k: (0, 0))
    cost = pl.CostEstimate(
        flops=int(2 * np_ * np_ * dp            # A @ msg
                  + 2 * np_ * dp * dp * grid[0]  # msg recomputed per row block
                  + 12 * np_ * dp * dp),         # 6 GRU gate matmuls
        transcendentals=int(3 * np_ * dp),
        bytes_accessed=int(2 * np_ * np_ + 4 * 3 * np_ * dp + 2 * 7 * dp * dp))
    return pl.pallas_call(
        _ggnn_layer_kernel,
        out_shape=jax.ShapeDtypeStruct((np_, dp), jnp.float32),
        grid=grid,
        in_specs=[
            pl.BlockSpec((tm, tk), lambda i, k: (i, k)),   # A tile (bf16)
            pl.BlockSpec((tk, dp), lambda i, k: (k, 0)),   # h, source block
            pl.BlockSpec((tm, dp), lambda i, k: (i, 0)),   # h, row block (GRU state)
            full_sq,                                       # W_l
            full_sq, full_sq, full_sq,                     # W_ir, W_iz, W_in
            full_sq, full_sq, full_sq,                     # W_hr, W_hz, W_hn
            bias, bias, bias, bias,                        # b_r, b_z, b_in, b_hn
        ],
        out_specs=pl.BlockSpec((tm, dp), lambda i, k: (i, 0)),
        scratch_shapes=[pltpu.VMEM((tm, dp), jnp.float32)],
        compiler_params=pltpu.CompilerParams(
            dimension_semantics=("parallel", "arbitrary"),
            vmem_limit_bytes=VMEM_LIMIT_BYTES),
        cost_estimate=cost,
    )(a_bf16, h, h, w_l,
      kp["wir"], kp["wiz"], kp["win"],
      kp["whr"], kp["whz"], kp["whn"],
      kp["b_r"], kp["b_z"], kp["b_in"], kp["b_hn"])


# --------------------------------------------------------------------------------------
# Kernel 2: GlobalAddPool (one-hot pooling matmul, tiled over nodes) + MLP head.
# --------------------------------------------------------------------------------------
def _head_kernel(p_ref, h_ref, w1_ref, b1_ref, wf1_ref, bf1_ref,
                 wf2_ref, bf2_ref, feat_ref, g_acc):
    k = pl.program_id(0)

    @pl.when(k == 0)
    def _():
        g_acc[...] = jnp.zeros_like(g_acc)

    g_acc[...] += jnp.dot(p_ref[...], h_ref[...].astype(jnp.bfloat16),
                          preferred_element_type=jnp.float32)

    @pl.when(k == pl.num_programs(0) - 1)
    def _():
        # layer1 -> feature[0]; ReLU; Dropout == identity in eval mode.
        out = jnp.maximum(
            jnp.dot(g_acc[...].astype(jnp.bfloat16), w1_ref[...],
                    preferred_element_type=jnp.float32) + b1_ref[...], 0.0)
        out = jnp.maximum(
            jnp.dot(out.astype(jnp.bfloat16), wf1_ref[...],
                    preferred_element_type=jnp.float32) + bf1_ref[...], 0.0)
        out = jnp.maximum(
            jnp.dot(out.astype(jnp.bfloat16), wf2_ref[...],
                    preferred_element_type=jnp.float32) + bf2_ref[...], 0.0)
        feat_ref[...] = out


def _pool_and_head(p_bf16, h, kp, *, tk):
    gp, np_ = p_bf16.shape
    dp = h.shape[1]
    grid = (np_ // tk,)

    def const(shape):
        return pl.BlockSpec(shape, lambda k: (0, 0))

    cost = pl.CostEstimate(
        flops=int(2 * gp * np_ * dp
                  + 2 * gp * (dp * MLP_HIDDEN + MLP_HIDDEN * MLP_INTERNAL
                              + MLP_INTERNAL * MLP_HIDDEN)),
        transcendentals=0,
        bytes_accessed=int(2 * gp * np_ + 4 * np_ * dp
                           + 2 * (dp + 2 * MLP_INTERNAL) * MLP_HIDDEN))
    return pl.pallas_call(
        _head_kernel,
        out_shape=jax.ShapeDtypeStruct((gp, MLP_HIDDEN), jnp.float32),
        grid=grid,
        in_specs=[
            pl.BlockSpec((gp, tk), lambda k: (0, k)),      # pooling matrix block
            pl.BlockSpec((tk, dp), lambda k: (k, 0)),      # node embeddings block
            const((dp, MLP_HIDDEN)), const((1, MLP_HIDDEN)),
            const((MLP_HIDDEN, MLP_INTERNAL)), const((1, MLP_INTERNAL)),
            const((MLP_INTERNAL, MLP_HIDDEN)), const((1, MLP_HIDDEN)),
        ],
        out_specs=pl.BlockSpec((gp, MLP_HIDDEN), lambda k: (0, 0)),
        scratch_shapes=[pltpu.VMEM((gp, dp), jnp.float32)],
        compiler_params=pltpu.CompilerParams(
            dimension_semantics=("arbitrary",),
            vmem_limit_bytes=VMEM_LIMIT_BYTES),
        cost_estimate=cost,
    )(p_bf16, h, kp["w1"], kp["b1"], kp["wf1"], kp["bf1"], kp["wf2"], kp["bf2"])


# --------------------------------------------------------------------------------------
# Parameter handling
# --------------------------------------------------------------------------------------
def init_params(key, input_dim):
    """Deterministic synthetic parameters, torch-style layouts ([out, in] for Linear)."""
    ks = jax.random.split(key, 12)
    s = 0.1
    return {
        # GatedGraphConv weight: [num_layers, out_channels, out_channels]
        "wgg": jax.random.normal(ks[0], (NUM_GGNN_LAYERS, input_dim, input_dim), jnp.float32) * s,
        # GRUCell: weight_ih / weight_hh are [3*hidden, input], biases [3*hidden]
        "wih": jax.random.normal(ks[1], (3 * input_dim, input_dim), jnp.float32) * s,
        "whh": jax.random.normal(ks[2], (3 * input_dim, input_dim), jnp.float32) * s,
        "bih": jax.random.normal(ks[3], (3 * input_dim,), jnp.float32) * s,
        "bhh": jax.random.normal(ks[4], (3 * input_dim,), jnp.float32) * s,
        # layer1: Linear(input_dim -> 256)
        "w1": jax.random.normal(ks[5], (MLP_HIDDEN, input_dim), jnp.float32) * s,
        "b1": jax.random.normal(ks[6], (MLP_HIDDEN,), jnp.float32) * s,
        # feature[0]: Linear(256 -> 128), Linear(128 -> 256)
        "wf1": jax.random.normal(ks[7], (MLP_INTERNAL, MLP_HIDDEN), jnp.float32) * s,
        "bf1": jax.random.normal(ks[8], (MLP_INTERNAL,), jnp.float32) * s,
        "wf2": jax.random.normal(ks[9], (MLP_HIDDEN, MLP_INTERNAL), jnp.float32) * s,
        "bf2": jax.random.normal(ks[10], (MLP_HIDDEN,), jnp.float32) * s,
        # classifier: Linear(256 -> 2) — applied in the wrapper (lane-dense kernels)
        "wc": jax.random.normal(ks[11], (NUM_CLASSES, MLP_HIDDEN), jnp.float32) * s,
        "bc": jnp.zeros((NUM_CLASSES,), jnp.float32),
    }


def _prep_kernel_params(params, d, dp):
    """Transpose to x@W layout, split GRU gates, zero-pad lanes to dp, cast bf16."""
    def pad_sq(w):
        return jnp.pad(w, ((0, dp - w.shape[0]), (0, dp - w.shape[1])))

    def gate(w, g):  # g in {0: reset, 1: update, 2: new}; returns [dp, dp] bf16
        return pad_sq(w[g * d:(g + 1) * d].T).astype(jnp.bfloat16)

    def pad_bias(b):
        return jnp.pad(b, (0, dp - d))[None, :].astype(jnp.float32)

    bih, bhh = params["bih"], params["bhh"]
    return {
        "wgg": jnp.pad(params["wgg"],
                       ((0, 0), (0, dp - d), (0, dp - d))).astype(jnp.bfloat16),
        "wir": gate(params["wih"], 0), "wiz": gate(params["wih"], 1),
        "win": gate(params["wih"], 2),
        "whr": gate(params["whh"], 0), "whz": gate(params["whh"], 1),
        "whn": gate(params["whh"], 2),
        "b_r": pad_bias(bih[0:d] + bhh[0:d]),            # r/z biases pre-summed
        "b_z": pad_bias(bih[d:2 * d] + bhh[d:2 * d]),
        "b_in": pad_bias(bih[2 * d:3 * d]),
        "b_hn": pad_bias(bhh[2 * d:3 * d]),
        "w1": jnp.pad(params["w1"].T, ((0, dp - d), (0, 0))).astype(jnp.bfloat16),
        "b1": params["b1"][None, :].astype(jnp.float32),
        "wf1": params["wf1"].T.astype(jnp.bfloat16),
        "bf1": params["bf1"][None, :].astype(jnp.float32),
        "wf2": params["wf2"].T.astype(jnp.bfloat16),
        "bf2": params["bf2"][None, :].astype(jnp.float32),
    }


# --------------------------------------------------------------------------------------
# Forward pass (matches ClassifyModel.forward with need_node_emb=False)
# --------------------------------------------------------------------------------------
@functools.partial(jax.jit, static_argnames=("num_graphs",))
def classify_model_forward(x, edge_index, batch, params, num_graphs):
    """Returns (feature_emb [G, 256], probs/logits [G, 2])."""
    n, d = x.shape
    dp = _round_up(d, LANE)
    tile = max(NODE_TILE_M, NODE_TILE_K)
    np_ = _round_up(n, tile)
    gp = _round_up(max(num_graphs, 8), 8)

    # ---- glue (XLA, not the hot path) ---------------------------------------
    # Dense adjacency A[target, source] = edge multiplicity (exact in bf16 < 256).
    src, dst = edge_index[0], edge_index[1]
    a = jnp.zeros((np_, np_), jnp.float32).at[dst, src].add(1.0).astype(jnp.bfloat16)
    # One-hot pooling matrix; padded nodes get batch id -1 -> never pooled.
    batch_p = jnp.pad(batch.astype(jnp.int32), (0, np_ - n), constant_values=-1)
    pool = (batch_p[None, :] ==
            jnp.arange(gp, dtype=jnp.int32)[:, None]).astype(jnp.bfloat16)
    # Node states, zero-padded to [np_, dp] (GGNN hidden size == input_dim here).
    h = jnp.pad(x.astype(jnp.float32), ((0, np_ - n), (0, dp - d)))

    kp = _prep_kernel_params(params, d, dp)

    # ---- GatedGraphConv: 5 propagation + shared-GRUCell steps ---------------
    for layer in range(NUM_GGNN_LAYERS):
        h = _ggnn_layer(h, a, kp["wgg"][layer], kp,
                        tm=NODE_TILE_M, tk=NODE_TILE_K)

    # ---- GlobalAddPool + MLP head (Dropout == identity in eval mode) --------
    feat = _pool_and_head(pool, h, kp, tk=NODE_TILE_K)[:num_graphs]

    # ---- classifier: tiny [G, 2] Linear stays in XLA (logits, as in nn.Linear)
    probs = jnp.dot(feat, params["wc"].T) + params["bc"][None, :]
    return feat, probs


if __name__ == "__main__":
    key = jax.random.PRNGKey(0)
    # input_dim = len(type_map) + model_args.vector_size is config-dependent.
    # TODO(synk): plug in the real type_map/vector_size dims when available.
    INPUT_DIM = 32
    N_NODES = 16
    N_EDGES = 40
    N_GRAPHS = 2

    k_x, k_e, k_p = jax.random.split(key, 3)
    x = jax.random.normal(k_x, (N_NODES, INPUT_DIM), jnp.float32)
    edge_index = jax.random.randint(k_e, (2, N_EDGES), 0, N_NODES, dtype=jnp.int32)
    batch = jnp.concatenate([
        jnp.zeros((N_NODES // 2,), jnp.int32),
        jnp.ones((N_NODES - N_NODES // 2,), jnp.int32),
    ])
    params = init_params(k_p, INPUT_DIM)

    feature_emb, probs = classify_model_forward(x, edge_index, batch, params,
                                                num_graphs=N_GRAPHS)
    jax.block_until_ready((feature_emb, probs))

    assert feature_emb.shape == (N_GRAPHS, MLP_HIDDEN)
    assert probs.shape == (N_GRAPHS, NUM_CLASSES)
    assert bool(jnp.all(jnp.isfinite(feature_emb))) and bool(jnp.all(jnp.isfinite(probs)))
    print("KERNEL_OK")
</pallas_src>

<mosaic_0001>
module attributes {stable_mosaic.version = 11 : i64} {
  func.func @_ggnn_layer_kernel(%arg0: i32, %arg1: i32, %arg2: memref<128x128xbf16, #tpu.memory_space<vmem>>, %arg3: memref<128x128xf32, #tpu.memory_space<vmem>>, %arg4: memref<128x128xf32, #tpu.memory_space<vmem>>, %arg5: memref<128x128xbf16, #tpu.memory_space<vmem>>, %arg6: memref<128x128xbf16, #tpu.memory_space<vmem>>, %arg7: memref<128x128xbf16, #tpu.memory_space<vmem>>, %arg8: memref<128x128xbf16, #tpu.memory_space<vmem>>, %arg9: memref<128x128xbf16, #tpu.memory_space<vmem>>, %arg10: memref<128x128xbf16, #tpu.memory_space<vmem>>, %arg11: memref<128x128xbf16, #tpu.memory_space<vmem>>, %arg12: memref<1x128xf32, #tpu.memory_space<vmem>>, %arg13: memref<1x128xf32, #tpu.memory_space<vmem>>, %arg14: memref<1x128xf32, #tpu.memory_space<vmem>>, %arg15: memref<1x128xf32, #tpu.memory_space<vmem>>, %arg16: memref<128x128xf32, #tpu.memory_space<vmem>>, %arg17: memref<128x128xf32, #tpu.memory_space<vmem>>) attributes {dimension_semantics = [#tpu.dimension_semantics<parallel>, #tpu.dimension_semantics<arbitrary>], iteration_bounds = array<i64: 1, 1>, scalar_prefetch = 0 : i64, scratch_operands = 1 : i64, tpu.core_type = #tpu.core_type<tc>, window_params = [{transform_indices = @transform_0, window_bounds = array<i64: 128, 128>}, {transform_indices = @transform_1, window_bounds = array<i64: 128, 128>}, {transform_indices = @transform_2, window_bounds = array<i64: 128, 128>}, {pipeline_mode = #tpu.pipeline_mode<synchronous>, transform_indices = @transform_3, window_bounds = array<i64: 128, 128>}, {pipeline_mode = #tpu.pipeline_mode<synchronous>, transform_indices = @transform_4, window_bounds = array<i64: 128, 128>}, {pipeline_mode = #tpu.pipeline_mode<synchronous>, transform_indices = @transform_5, window_bounds = array<i64: 128, 128>}, {pipeline_mode = #tpu.pipeline_mode<synchronous>, transform_indices = @transform_6, window_bounds = array<i64: 128, 128>}, {pipeline_mode = #tpu.pipeline_mode<synchronous>, transform_indices = @transform_7, window_bounds = array<i64: 128, 128>}, {pipeline_mode = #tpu.pipeline_mode<synchronous>, transform_indices = @transform_8, window_bounds = array<i64: 128, 128>}, {pipeline_mode = #tpu.pipeline_mode<synchronous>, transform_indices = @transform_9, window_bounds = array<i64: 128, 128>}, {pipeline_mode = #tpu.pipeline_mode<synchronous>, transform_indices = @transform_10, window_bounds = array<i64: 1, 128>}, {pipeline_mode = #tpu.pipeline_mode<synchronous>, transform_indices = @transform_11, window_bounds = array<i64: 1, 128>}, {pipeline_mode = #tpu.pipeline_mode<synchronous>, transform_indices = @transform_12, window_bounds = array<i64: 1, 128>}, {pipeline_mode = #tpu.pipeline_mode<synchronous>, transform_indices = @transform_13, window_bounds = array<i64: 1, 128>}, {transform_indices = @transform_14, window_bounds = array<i64: 128, 128>}]} {
    %c0_i32 = arith.constant 0 : i32
    %0 = arith.cmpi eq, %arg1, %c0_i32 : i32
    %1 = arith.extui %0 : i1 to i32
    %c0_i32_0 = arith.constant 0 : i32
    %2 = arith.cmpi ne, %1, %c0_i32_0 : i32
    scf.if %2 {
      %cst_13 = arith.constant 0.000000e+00 : f32
      %16 = vector.broadcast %cst_13 : f32 to vector<128x128xf32>
      %c0_14 = arith.constant 0 : index
      %c0_15 = arith.constant 0 : index
      %17 = vector.load %arg17[%c0_14, %c0_15] : memref<128x128xf32, #tpu.memory_space<vmem>>, vector<128x128xf32>
      tpu.vector_store %arg17[%c0_14, %c0_15], %16 {strides = array<i32>} : memref<128x128xf32, #tpu.memory_space<vmem>>, vector<128x128xf32>,
    } else {
    }
    %c0 = arith.constant 0 : index
    %c0_1 = arith.constant 0 : index
    %3 = vector.load %arg3[%c0, %c0_1] : memref<128x128xf32, #tpu.memory_space<vmem>>, vector<128x128xf32>
    %4 = arith.truncf %3 : vector<128x128xf32> to vector<128x128xbf16>
    %c0_2 = arith.constant 0 : index
    %c0_3 = arith.constant 0 : index
    %5 = vector.load %arg5[%c0_2, %c0_3] : memref<128x128xbf16, #tpu.memory_space<vmem>>, vector<128x128xbf16>
    %cst = arith.constant dense<0.000000e+00> : vector<128x128xf32>
    %6 = tpu.matmul %4, %5, %cst {dimension_numbers = #tpu.dot_dimension_numbers<[1], [0], [0], [1], [0, 0, 1, 1], [], []>} : vector<128x128xbf16>, vector<128x128xbf16>, vector<128x128xf32> -> vector<128x128xf32>
    %c0_4 = arith.constant 0 : index
    %c0_5 = arith.constant 0 : index
    %7 = vector.load %arg17[%c0_4, %c0_5] : memref<128x128xf32, #tpu.memory_space<vmem>>, vector<128x128xf32>
    %c0_6 = arith.constant 0 : index
    %c0_7 = arith.constant 0 : index
    %8 = vector.load %arg2[%c0_6, %c0_7] : memref<128x128xbf16, #tpu.memory_space<vmem>>, vector<128x128xbf16>
    %9 = arith.truncf %6 : vector<128x128xf32> to vector<128x128xbf16>
    %cst_8 = arith.constant dense<0.000000e+00> : vector<128x128xf32>
    %10 = tpu.matmul %8, %9, %cst_8 {dimension_numbers = #tpu.dot_dimension_numbers<[1], [0], [0], [1], [0, 0, 1, 1], [], []>} : vector<128x128xbf16>, vector<128x128xbf16>, vector<128x128xf32> -> vector<128x128xf32>
    %11 = arith.addf %7, %10 : vector<128x128xf32>
    %c0_9 = arith.constant 0 : index
    %c0_10 = arith.constant 0 : index
    %12 = vector.load %arg17[%c0_9, %c0_10] : memref<128x128xf32, #tpu.memory_space<vmem>>, vector<128x128xf32>
    tpu.vector_store %arg17[%c0_9, %c0_10], %11 {strides = array<i32>} : memref<128x128xf32, #tpu.memory_space<vmem>>, vector<128x128xf32>,
    %c0_i32_11 = arith.constant 0 : i32
    %13 = arith.cmpi eq, %arg1, %c0_i32_11 : i32
    %14 = arith.extui %13 : i1 to i32
    %c0_i32_12 = arith.constant 0 : i32
    %15 = arith.cmpi ne, %14, %c0_i32_12 : i32
    scf.if %15 {
      %c0_13 = arith.constant 0 : index
      %c0_14 = arith.constant 0 : index
      %16 = vector.load %arg4[%c0_13, %c0_14] : memref<128x128xf32, #tpu.memory_space<vmem>>, vector<128x128xf32>
      %17 = arith.truncf %16 : vector<128x128xf32> to vector<128x128xbf16>
      %c0_15 = arith.constant 0 : index
      %c0_16 = arith.constant 0 : index
      %18 = vector.load %arg17[%c0_15, %c0_16] : memref<128x128xf32, #tpu.memory_space<vmem>>, vector<128x128xf32>
      %19 = arith.truncf %18 : vector<128x128xf32> to vector<128x128xbf16>
      %c0_17 = arith.constant 0 : index
      %c0_18 = arith.constant 0 : index
      %20 = vector.load %arg6[%c0_17, %c0_18] : memref<128x128xbf16, #tpu.memory_space<vmem>>, vector<128x128xbf16>
      %cst_19 = arith.constant dense<0.000000e+00> : vector<128x128xf32>
      %21 = tpu.matmul %19, %20, %cst_19 {dimension_numbers = #tpu.dot_dimension_numbers<[1], [0], [0], [1], [0, 0, 1, 1], [], []>} : vector<128x128xbf16>, vector<128x128xbf16>, vector<128x128xf32> -> vector<128x128xf32>
      %c0_20 = arith.constant 0 : index
      %c0_21 = arith.constant 0 : index
      %22 = vector.load %arg9[%c0_20, %c0_21] : memref<128x128xbf16, #tpu.memory_space<vmem>>, vector<128x128xbf16>
      %cst_22 = arith.constant dense<0.000000e+00> : vector<128x128xf32>
      %23 = tpu.matmul %17, %22, %cst_22 {dimension_numbers = #tpu.dot_dimension_numbers<[1], [0], [0], [1], [0, 0, 1, 1], [], []>} : vector<128x128xbf16>, vector<128x128xbf16>, vector<128x128xf32> -> vector<128x128xf32>
      %24 = arith.addf %21, %23 : vector<128x128xf32>
      %c0_23 = arith.constant 0 : index
      %c0_24 = arith.constant 0 : index
      %25 = vector.load %arg12[%c0_23, %c0_24] : memref<1x128xf32, #tpu.memory_space<vmem>>, vector<1x128xf32>
      %26 = vector.broadcast %25 : vector<1x128xf32> to vector<128x128xf32>
      %27 = arith.addf %24, %26 : vector<128x128xf32>
      %28 = arith.negf %27 : vector<128x128xf32>
      %29 = math.exp %28 : vector<128x128xf32>
      %cst_25 = arith.constant 1.000000e+00 : f32
      %30 = vector.broadcast %cst_25 : f32 to vector<128x128xf32>
      %31 = arith.addf %30, %29 : vector<128x128xf32>
      %32 = arith.divf %30, %31 : vector<128x128xf32>
      %c0_26 = arith.constant 0 : index
      %c0_27 = arith.constant 0 : index
      %33 = vector.load %arg7[%c0_26, %c0_27] : memref<128x128xbf16, #tpu.memory_space<vmem>>, vector<128x128xbf16>
      %cst_28 = arith.constant dense<0.000000e+00> : vector<128x128xf32>
      %34 = tpu.matmul %19, %33, %cst_28 {dimension_numbers = #tpu.dot_dimension_numbers<[1], [0], [0], [1], [0, 0, 1, 1], [], []>} : vector<128x128xbf16>, vector<128x128xbf16>, vector<128x128xf32> -> vector<128x128xf32>
      %c0_29 = arith.constant 0 : index
      %c0_30 = arith.constant 0 : index
      %35 = vector.load %arg10[%c0_29, %c0_30] : memref<128x128xbf16, #tpu.memory_space<vmem>>, vector<128x128xbf16>
      %cst_31 = arith.constant dense<0.000000e+00> : vector<128x128xf32>
      %36 = tpu.matmul %17, %35, %cst_31 {dimension_numbers = #tpu.dot_dimension_numbers<[1], [0], [0], [1], [0, 0, 1, 1], [], []>} : vector<128x128xbf16>, vector<128x128xbf16>, vector<128x128xf32> -> vector<128x128xf32>
      %37 = arith.addf %34, %36 : vector<128x128xf32>
      %c0_32 = arith.constant 0 : index
      %c0_33 = arith.constant 0 : index
      %38 = vector.load %arg13[%c0_32, %c0_33] : memref<1x128xf32, #tpu.memory_space<vmem>>, vector<1x128xf32>
      %39 = vector.broadcast %38 : vector<1x128xf32> to vector<128x128xf32>
      %40 = arith.addf %37, %39 : vector<128x128xf32>
      %41 = arith.negf %40 : vector<128x128xf32>
      %42 = math.exp %41 : vector<128x128xf32>
      %cst_34 = arith.constant 1.000000e+00 : f32
      %43 = vector.broadcast %cst_34 : f32 to vector<128x128xf32>
      %44 = arith.addf %43, %42 : vector<128x128xf32>
      %45 = arith.divf %43, %44 : vector<128x128xf32>
      %c0_35 = arith.constant 0 : index
      %c0_36 = arith.constant 0 : index
      %46 = vector.load %arg8[%c0_35, %c0_36] : memref<128x128xbf16, #tpu.memory_space<vmem>>, vector<128x128xbf16>
      %cst_37 = arith.constant dense<0.000000e+00> : vector<128x128xf32>
      %47 = tpu.matmul %19, %46, %cst_37 {dimension_numbers = #tpu.dot_dimension_numbers<[1], [0], [0], [1], [0, 0, 1, 1], [], []>} : vector<128x128xbf16>, vector<128x128xbf16>, vector<128x128xf32> -> vector<128x128xf32>
      %c0_38 = arith.constant 0 : index
      %c0_39 = arith.constant 0 : index
      %48 = vector.load %arg14[%c0_38, %c0_39] : memref<1x128xf32, #tpu.memory_space<vmem>>, vector<1x128xf32>
      %49 = vector.broadcast %48 : vector<1x128xf32> to vector<128x128xf32>
      %50 = arith.addf %47, %49 : vector<128x128xf32>
      %c0_40 = arith.constant 0 : index
      %c0_41 = arith.constant 0 : index
      %51 = vector.load %arg11[%c0_40, %c0_41] : memref<128x128xbf16, #tpu.memory_space<vmem>>, vector<128x128xbf16>
      %cst_42 = arith.constant dense<0.000000e+00> : vector<128x128xf32>
      %52 = tpu.matmul %17, %51, %cst_42 {dimension_numbers = #tpu.dot_dimension_numbers<[1], [0], [0], [1], [0, 0, 1, 1], [], []>} : vector<128x128xbf16>, vector<128x128xbf16>, vector<128x128xf32> -> vector<128x128xf32>
      %c0_43 = arith.constant 0 : index
      %c0_44 = arith.constant 0 : index
      %53 = vector.load %arg15[%c0_43, %c0_44] : memref<1x128xf32, #tpu.memory_space<vmem>>, vector<1x128xf32>
      %54 = vector.broadcast %53 : vector<1x128xf32> to vector<128x128xf32>
      %55 = arith.addf %52, %54 : vector<128x128xf32>
      %56 = arith.mulf %32, %55 : vector<128x128xf32>
      %57 = arith.addf %50, %56 : vector<128x128xf32>
      %58 = math.tanh %57 : vector<128x128xf32>
      %cst_45 = arith.constant 1.000000e+00 : f32
      %59 = vector.broadcast %cst_45 : f32 to vector<128x128xf32>
      %60 = arith.subf %59, %45 : vector<128x128xf32>
      %61 = arith.mulf %60, %58 : vector<128x128xf32>
      %62 = arith.mulf %45, %16 : vector<128x128xf32>
      %63 = arith.addf %61, %62 : vector<128x128xf32>
      %c0_46 = arith.constant 0 : index
      %c0_47 = arith.constant 0 : index
      %64 = vector.load %arg16[%c0_46, %c0_47] : memref<128x128xf32, #tpu.memory_space<vmem>>, vector<128x128xf32>
      tpu.vector_store %arg16[%c0_46, %c0_47], %63 {strides = array<i32>} : memref<128x128xf32, #tpu.memory_space<vmem>>, vector<128x128xf32>,
    } else {
    }
    return
  }
  func.func @transform_0(%arg0: i32, %arg1: i32) -> (i32, i32) {
    %c0_i32 = arith.constant 0 : i32
    return %arg0, %arg1 : i32, i32
  }
  func.func @transform_1(%arg0: i32, %arg1: i32) -> (i32, i32) {
    %c0_i32 = arith.constant 0 : i32
    %c0_i32_0 = arith.constant 0 : i32
    return %arg1, %c0_i32 : i32, i32
  }
  func.func @transform_2(%arg0: i32, %arg1: i32) -> (i32, i32) {
    %c0_i32 = arith.constant 0 : i32
    %c0_i32_0 = arith.constant 0 : i32
    return %arg0, %c0_i32 : i32, i32
  }
  func.func @transform_3(%arg0: i32, %arg1: i32) -> (i32, i32) {
    %c0_i32 = arith.constant 0 : i32
    %c0_i32_0 = arith.constant 0 : i32
    %c0_i32_1 = arith.constant 0 : i32
    return %c0_i32, %c0_i32_0 : i32, i32
  }
  func.func @transform_4(%arg0: i32, %arg1: i32) -> (i32, i32) {
    %c0_i32 = arith.constant 0 : i32
    %c0_i32_0 = arith.constant 0 : i32
    %c0_i32_1 = arith.constant 0 : i32
    return %c0_i32, %c0_i32_0 : i32, i32
  }
  func.func @transform_5(%arg0: i32, %arg1: i32) -> (i32, i32) {
    %c0_i32 = arith.constant 0 : i32
    %c0_i32_0 = arith.constant 0 : i32
    %c0_i32_1 = arith.constant 0 : i32
    return %c0_i32, %c0_i32_0 : i32, i32
  }
  func.func @transform_6(%arg0: i32, %arg1: i32) -> (i32, i32) {
    %c0_i32 = arith.constant 0 : i32
    %c0_i32_0 = arith.constant 0 : i32
    %c0_i32_1 = arith.constant 0 : i32
    return %c0_i32, %c0_i32_0 : i32, i32
  }
  func.func @transform_7(%arg0: i32, %arg1: i32) -> (i32, i32) {
    %c0_i32 = arith.constant 0 : i32
    %c0_i32_0 = arith.constant 0 : i32
    %c0_i32_1 = arith.constant 0 : i32
    return %c0_i32, %c0_i32_0 : i32, i32
  }
  func.func @transform_8(%arg0: i32, %arg1: i32) -> (i32, i32) {
    %c0_i32 = arith.constant 0 : i32
    %c0_i32_0 = arith.constant 0 : i32
    %c0_i32_1 = arith.constant 0 : i32
    return %c0_i32, %c0_i32_0 : i32, i32
  }
  func.func @transform_9(%arg0: i32, %arg1: i32) -> (i32, i32) {
    %c0_i32 = arith.constant 0 : i32
    %c0_i32_0 = arith.constant 0 : i32
    %c0_i32_1 = arith.constant 0 : i32
    return %c0_i32, %c0_i32_0 : i32, i32
  }
  func.func @transform_10(%arg0: i32, %arg1: i32) -> (i32, i32) {
    %c0_i32 = arith.constant 0 : i32
    %c0_i32_0 = arith.constant 0 : i32
    %c0_i32_1 = arith.constant 0 : i32
    return %c0_i32, %c0_i32_0 : i32, i32
  }
  func.func @transform_11(%arg0: i32, %arg1: i32) -> (i32, i32) {
    %c0_i32 = arith.constant 0 : i32
    %c0_i32_0 = arith.constant 0 : i32
    %c0_i32_1 = arith.constant 0 : i32
    return %c0_i32, %c0_i32_0 : i32, i32
  }
  func.func @transform_12(%arg0: i32, %arg1: i32) -> (i32, i32) {
    %c0_i32 = arith.constant 0 : i32
    %c0_i32_0 = arith.constant 0 : i32
    %c0_i32_1 = arith.constant 0 : i32
    return %c0_i32, %c0_i32_0 : i32, i32
  }
  func.func @transform_13(%arg0: i32, %arg1: i32) -> (i32, i32) {
    %c0_i32 = arith.constant 0 : i32
    %c0_i32_0 = arith.constant 0 : i32
    %c0_i32_1 = arith.constant 0 : i32
    return %c0_i32, %c0_i32_0 : i32, i32
  }
  func.func @transform_14(%arg0: i32, %arg1: i32) -> (i32, i32) {
    %c0_i32 = arith.constant 0 : i32
    %c0_i32_0 = arith.constant 0 : i32
    return %arg0, %c0_i32 : i32, i32
  }
}

module attributes {stable_mosaic.version = 11 : i64} {
  func.func @_head_kernel(%arg0: i32, %arg1: memref<8x128xbf16, #tpu.memory_space<vmem>>, %arg2: memref<128x128xf32, #tpu.memory_space<vmem>>, %arg3: memref<128x256xbf16, #tpu.memory_space<vmem>>, %arg4: memref<1x256xf32, #tpu.memory_space<vmem>>, %arg5: memref<256x128xbf16, #tpu.memory_space<vmem>>, %arg6: memref<1x128xf32, #tpu.memory_space<vmem>>, %arg7: memref<128x256xbf16, #tpu.memory_space<vmem>>, %arg8: memref<1x256xf32, #tpu.memory_space<vmem>>, %arg9: memref<8x256xf32, #tpu.memory_space<vmem>>, %arg10: memref<8x128xf32, #tpu.memory_space<vmem>>) attributes {dimension_semantics = [#tpu.dimension_semantics<arbitrary>], iteration_bounds = array<i64: 1>, scalar_prefetch = 0 : i64, scratch_operands = 1 : i64, tpu.core_type = #tpu.core_type<tc>, window_params = [{transform_indices = @transform_0, window_bounds = array<i64: 8, 128>}, {transform_indices = @transform_1, window_bounds = array<i64: 128, 128>}, {pipeline_mode = #tpu.pipeline_mode<synchronous>, transform_indices = @transform_2, window_bounds = array<i64: 128, 256>}, {pipeline_mode = #tpu.pipeline_mode<synchronous>, transform_indices = @transform_3, window_bounds = array<i64: 1, 256>}, {pipeline_mode = #tpu.pipeline_mode<synchronous>, transform_indices = @transform_4, window_bounds = array<i64: 256, 128>}, {pipeline_mode = #tpu.pipeline_mode<synchronous>, transform_indices = @transform_5, window_bounds = array<i64: 1, 128>}, {pipeline_mode = #tpu.pipeline_mode<synchronous>, transform_indices = @transform_6, window_bounds = array<i64: 128, 256>}, {pipeline_mode = #tpu.pipeline_mode<synchronous>, transform_indices = @transform_7, window_bounds = array<i64: 1, 256>}, {pipeline_mode = #tpu.pipeline_mode<synchronous>, transform_indices = @transform_8, window_bounds = array<i64: 8, 256>}]} {
    %c0_i32 = arith.constant 0 : i32
    %0 = arith.cmpi eq, %arg0, %c0_i32 : i32
    %1 = arith.extui %0 : i1 to i32
    %c0_i32_0 = arith.constant 0 : i32
    %2 = arith.cmpi ne, %1, %c0_i32_0 : i32
    scf.if %2 {
      %cst_10 = arith.constant 0.000000e+00 : f32
      %13 = vector.broadcast %cst_10 : f32 to vector<8x128xf32>
      %c0_11 = arith.constant 0 : index
      %c0_12 = arith.constant 0 : index
      %14 = vector.load %arg10[%c0_11, %c0_12] : memref<8x128xf32, #tpu.memory_space<vmem>>, vector<8x128xf32>
      tpu.vector_store %arg10[%c0_11, %c0_12], %13 {strides = array<i32>} : memref<8x128xf32, #tpu.memory_space<vmem>>, vector<8x128xf32>,
    } else {
    }
    %c0 = arith.constant 0 : index
    %c0_1 = arith.constant 0 : index
    %3 = vector.load %arg10[%c0, %c0_1] : memref<8x128xf32, #tpu.memory_space<vmem>>, vector<8x128xf32>
    %c0_2 = arith.constant 0 : index
    %c0_3 = arith.constant 0 : index
    %4 = vector.load %arg1[%c0_2, %c0_3] : memref<8x128xbf16, #tpu.memory_space<vmem>>, vector<8x128xbf16>
    %c0_4 = arith.constant 0 : index
    %c0_5 = arith.constant 0 : index
    %5 = vector.load %arg2[%c0_4, %c0_5] : memref<128x128xf32, #tpu.memory_space<vmem>>, vector<128x128xf32>
    %6 = arith.truncf %5 : vector<128x128xf32> to vector<128x128xbf16>
    %cst = arith.constant dense<0.000000e+00> : vector<8x128xf32>
    %7 = tpu.matmul %4, %6, %cst {dimension_numbers = #tpu.dot_dimension_numbers<[1], [0], [0], [1], [0, 0, 1, 1], [], []>} : vector<8x128xbf16>, vector<128x128xbf16>, vector<8x128xf32> -> vector<8x128xf32>
    %8 = arith.addf %3, %7 : vector<8x128xf32>
    %c0_6 = arith.constant 0 : index
    %c0_7 = arith.constant 0 : index
    %9 = vector.load %arg10[%c0_6, %c0_7] : memref<8x128xf32, #tpu.memory_space<vmem>>, vector<8x128xf32>
    tpu.vector_store %arg10[%c0_6, %c0_7], %8 {strides = array<i32>} : memref<8x128xf32, #tpu.memory_space<vmem>>, vector<8x128xf32>,
    %c0_i32_8 = arith.constant 0 : i32
    %10 = arith.cmpi eq, %arg0, %c0_i32_8 : i32
    %11 = arith.extui %10 : i1 to i32
    %c0_i32_9 = arith.constant 0 : i32
    %12 = arith.cmpi ne, %11, %c0_i32_9 : i32
    scf.if %12 {
      %c0_10 = arith.constant 0 : index
      %c0_11 = arith.constant 0 : index
      %13 = vector.load %arg10[%c0_10, %c0_11] : memref<8x128xf32, #tpu.memory_space<vmem>>, vector<8x128xf32>
      %14 = arith.truncf %13 : vector<8x128xf32> to vector<8x128xbf16>
      %c0_12 = arith.constant 0 : index
      %c0_13 = arith.constant 0 : index
      %15 = vector.load %arg3[%c0_12, %c0_13] : memref<128x256xbf16, #tpu.memory_space<vmem>>, vector<128x256xbf16>
      %cst_14 = arith.constant dense<0.000000e+00> : vector<8x256xf32>
      %16 = tpu.matmul %14, %15, %cst_14 {dimension_numbers = #tpu.dot_dimension_numbers<[1], [0], [0], [1], [0, 0, 1, 1], [], []>} : vector<8x128xbf16>, vector<128x256xbf16>, vector<8x256xf32> -> vector<8x256xf32>
      %c0_15 = arith.constant 0 : index
      %c0_16 = arith.constant 0 : index
      %17 = vector.load %arg4[%c0_15, %c0_16] : memref<1x256xf32, #tpu.memory_space<vmem>>, vector<1x256xf32>
      %18 = vector.broadcast %17 : vector<1x256xf32> to vector<8x256xf32>
      %19 = arith.addf %16, %18 : vector<8x256xf32>
      %cst_17 = arith.constant 0.000000e+00 : f32
      %20 = vector.broadcast %cst_17 : f32 to vector<8x256xf32>
      %21 = arith.maximumf %19, %20 : vector<8x256xf32>
      %22 = arith.truncf %21 : vector<8x256xf32> to vector<8x256xbf16>
      %c0_18 = arith.constant 0 : index
      %c0_19 = arith.constant 0 : index
      %23 = vector.load %arg5[%c0_18, %c0_19] : memref<256x128xbf16, #tpu.memory_space<vmem>>, vector<256x128xbf16>
      %cst_20 = arith.constant dense<0.000000e+00> : vector<8x128xf32>
      %24 = tpu.matmul %22, %23, %cst_20 {dimension_numbers = #tpu.dot_dimension_numbers<[1], [0], [0], [1], [0, 0, 1, 1], [], []>} : vector<8x256xbf16>, vector<256x128xbf16>, vector<8x128xf32> -> vector<8x128xf32>
      %c0_21 = arith.constant 0 : index
      %c0_22 = arith.constant 0 : index
      %25 = vector.load %arg6[%c0_21, %c0_22] : memref<1x128xf32, #tpu.memory_space<vmem>>, vector<1x128xf32>
      %26 = vector.broadcast %25 : vector<1x128xf32> to vector<8x128xf32>
      %27 = arith.addf %24, %26 : vector<8x128xf32>
      %cst_23 = arith.constant 0.000000e+00 : f32
      %28 = vector.broadcast %cst_23 : f32 to vector<8x128xf32>
      %29 = arith.maximumf %27, %28 : vector<8x128xf32>
      %30 = arith.truncf %29 : vector<8x128xf32> to vector<8x128xbf16>
      %c0_24 = arith.constant 0 : index
      %c0_25 = arith.constant 0 : index
      %31 = vector.load %arg7[%c0_24, %c0_25] : memref<128x256xbf16, #tpu.memory_space<vmem>>, vector<128x256xbf16>
      %cst_26 = arith.constant dense<0.000000e+00> : vector<8x256xf32>
      %32 = tpu.matmul %30, %31, %cst_26 {dimension_numbers = #tpu.dot_dimension_numbers<[1], [0], [0], [1], [0, 0, 1, 1], [], []>} : vector<8x128xbf16>, vector<128x256xbf16>, vector<8x256xf32> -> vector<8x256xf32>
      %c0_27 = arith.constant 0 : index
      %c0_28 = arith.constant 0 : index
      %33 = vector.load %arg8[%c0_27, %c0_28] : memref<1x256xf32, #tpu.memory_space<vmem>>, vector<1x256xf32>
      %34 = vector.broadcast %33 : vector<1x256xf32> to vector<8x256xf32>
      %35 = arith.addf %32, %34 : vector<8x256xf32>
      %cst_29 = arith.constant 0.000000e+00 : f32
      %36 = vector.broadcast %cst_29 : f32 to vector<8x256xf32>
      %37 = arith.maximumf %35, %36 : vector<8x256xf32>
      %c0_30 = arith.constant 0 : index
      %c0_31 = arith.constant 0 : index
      %38 = vector.load %arg9[%c0_30, %c0_31] : memref<8x256xf32, #tpu.memory_space<vmem>>, vector<8x256xf32>
      tpu.vector_store %arg9[%c0_30, %c0_31], %37 {strides = array<i32>} : memref<8x256xf32, #tpu.memory_space<vmem>>, vector<8x256xf32>,
    } else {
    }
    return
  }
  func.func @transform_0(%arg0: i32) -> (i32, i32) {
    %c0_i32 = arith.constant 0 : i32
    %c0_i32_0 = arith.constant 0 : i32
    return %c0_i32, %arg0 : i32, i32
  }
  func.func @transform_1(%arg0: i32) -> (i32, i32) {
    %c0_i32 = arith.constant 0 : i32
    %c0_i32_0 = arith.constant 0 : i32
    return %arg0, %c0_i32 : i32, i32
  }
  func.func @transform_2(%arg0: i32) -> (i32, i32) {
    %c0_i32 = arith.constant 0 : i32
    %c0_i32_0 = arith.constant 0 : i32
    %c0_i32_1 = arith.constant 0 : i32
    return %c0_i32, %c0_i32_0 : i32, i32
  }
  func.func @transform_3(%arg0: i32) -> (i32, i32) {
    %c0_i32 = arith.constant 0 : i32
    %c0_i32_0 = arith.constant 0 : i32
    %c0_i32_1 = arith.constant 0 : i32
    return %c0_i32, %c0_i32_0 : i32, i32
  }
  func.func @transform_4(%arg0: i32) -> (i32, i32) {
    %c0_i32 = arith.constant 0 : i32
    %c0_i32_0 = arith.constant 0 : i32
    %c0_i32_1 = arith.constant 0 : i32
    return %c0_i32, %c0_i32_0 : i32, i32
  }
  func.func @transform_5(%arg0: i32) -> (i32, i32) {
    %c0_i32 = arith.constant 0 : i32
    %c0_i32_0 = arith.constant 0 : i32
    %c0_i32_1 = arith.constant 0 : i32
    return %c0_i32, %c0_i32_0 : i32, i32
  }
  func.func @transform_6(%arg0: i32) -> (i32, i32) {
    %c0_i32 = arith.constant 0 : i32
    %c0_i32_0 = arith.constant 0 : i32
    %c0_i32_1 = arith.constant 0 : i32
    return %c0_i32, %c0_i32_0 : i32, i32
  }
  func.func @transform_7(%arg0: i32) -> (i32, i32) {
    %c0_i32 = arith.constant 0 : i32
    %c0_i32_0 = arith.constant 0 : i32
    %c0_i32_1 = arith.constant 0 : i32
    return %c0_i32, %c0_i32_0 : i32, i32
  }
  func.func @transform_8(%arg0: i32) -> (i32, i32) {
    %c0_i32 = arith.constant 0 : i32
    %c0_i32_0 = arith.constant 0 : i32
    %c0_i32_1 = arith.constant 0 : i32
    return %c0_i32, %c0_i32_0 : i32, i32
  }
}

</mosaic_0001>

<bundles_post_ra>
// kernel: classify_model_forward.11
= control target key start
LH: loop header
LB: loop body
LE: loop exit
PB: predicated region body
PF: predicated region fallthrough
CT: control target
= control target key end

     0   :  { %s1100_s1 = inlined_call_operand.vmem [shape: f32[128,128], index: 1, kind: input, shape index: {}]   ;;  %s1101_s2 = inlined_call_operand.vmem [shape: bf16[128,256], index: 2, kind: input, shape index: {}]   ;;  %s1102_s0 = inlined_call_operand.vmem [shape: bf16[8,128], index: 0, kind: input, shape index: {}]   ;;  %s1103_s4 = inlined_call_operand.vmem [shape: bf16[256,128], index: 4, kind: input, shape index: {}]   ;;  %s1104_s5 = inlined_call_operand.vmem [shape: f32[1,128], index: 5, kind: input, shape index: {}]   ;;  %s1105_s6 = inlined_call_operand.vmem [shape: bf16[128,256], index: 6, kind: input, shape index: {}]   ;;  %s1106_s3 = inlined_call_operand.vmem [shape: f32[1,256], index: 3, kind: input, shape index: {}]   ;;  %s1107_s7 = inlined_call_operand.vmem [shape: f32[1,256], index: 7, kind: input, shape index: {}]   ;;  %s1108_s8 = inlined_call_operand.vmem [shape: f32[8,256], index: 8, kind: output, shape index: {}]  }
   0x1   :  { %v50_v0 = vld [vmem:[%s1100_s1 + $0x70] sm:$0xff]  ;;  %v51_v1 = vld [vmem:[%s1100_s1 + $0x78] sm:$0xff]  ;;  %v48_v2 = vld [vmem:[%s1100_s1 + $0x60] sm:$0xff] }
   0x2   :  { %v59_v3 = vpack.c.bf16 %v51_v1, %v50_v0  ;;  %v49_v4 = vld [vmem:[%s1100_s1 + $0x68] sm:$0xff]  ;;  %v46_v6 = vld [vmem:[%s1100_s1 + $0x50] sm:$0xff]  ;;  %v47_v7 = vld [vmem:[%s1100_s1 + $0x58] sm:$0xff] }
   0x3   :  { %v58_v5 = vpack.c.bf16 %v49_v4, %v48_v2  ;;  %v566_v8 = vld [vmem:[%s1101_s2 + $0x70] sm:$0xf]  ;;  %v715_v9 = vld [vmem:[%s1101_s2 + $0x74] sm:$0xf0]  ;;  %v714_v10 = vld [vmem:[%s1101_s2 + $0x74] sm:$0xf]  ;;  %v57_v12 = vpack.c.bf16 %v47_v7, %v46_v6 }
   0x4   :  { %60 = vmatpush.bf16.msra.mxu0 %v59_v3  ;;  %v568_v11 = vld [vmem:[%s1101_s2 + $0x78] sm:$0xf0]  ;;  %v567_v13 = vor.u32 %v715_v9, %v566_v8  ;;  %v558_v15 = vld [vmem:[%s1101_s2 + $0x60] sm:$0xf]  ;;  %v713_v16 = vld [vmem:[%s1101_s2 + $0x64] sm:$0xf0] }
   0x5   :  { %v571_v14 = vor.u32 %v714_v10, %v568_v11  ;;  %v712_v17 = vld [vmem:[%s1101_s2 + $0x64] sm:$0xf]  ;;  %v45_v19 = vld [vmem:[%s1100_s1 + $0x48] sm:$0xff]  ;;  %v559_v21 = vor.u32 %v713_v16, %v558_v15  ;;  %v550_v23 = vld [vmem:[%s1101_s2 + $0x50] sm:$0xf] }
   0x6   :  { %v44_v18 = vld [vmem:[%s1100_s1 + $0x40] sm:$0xff]  ;;  %v560_v20 = vld [vmem:[%s1101_s2 + $0x68] sm:$0xf0]  ;;  %182 = vmatpush.bf16.msra.mxu1 %v567_v13  ;;  %v711_v24 = vld [vmem:[%s1101_s2 + $0x54] sm:$0xf0] }
   0x7   :  { %195 = vmatpush.bf16.msra.mxu2 %v571_v14  ;;  %v563_v22 = vor.u32 %v712_v17, %v560_v20  ;;  %v710_v25 = vld [vmem:[%s1101_s2 + $0x54] sm:$0xf]  ;;  %v552_v26 = vld [vmem:[%s1101_s2 + $0x58] sm:$0xf0]  ;;  %v56_v27 = vpack.c.bf16 %v45_v19, %v44_v18  ;;  %v551_v30 = vor.u32 %v711_v24, %v550_v23  ;;  %v542_v32 = vld [vmem:[%s1101_s2 + $0x40] sm:$0xf] }
   0x8   :  { %61 = vmatpush.bf16.msra.mxu0 %v58_v5  ;;  %v42_v28 = vld [vmem:[%s1100_s1 + $0x30] sm:$0xff]  ;;  %v43_v29 = vld [vmem:[%s1100_s1 + $0x38] sm:$0xff]  ;;  %v555_v31 = vor.u32 %v710_v25, %v552_v26  ;;  %v709_v33 = vld [vmem:[%s1101_s2 + $0x44] sm:$0xf0] }
   0x9   :  { %v708_v34 = vld [vmem:[%s1101_s2 + $0x44] sm:$0xf]  ;;  %v544_v35 = vld [vmem:[%s1101_s2 + $0x48] sm:$0xf0]  ;;  %v55_v36 = vpack.c.bf16 %v43_v29, %v42_v28  ;;  %v543_v39 = vor.u32 %v709_v33, %v542_v32  ;;  %v534_v41 = vld [vmem:[%s1101_s2 + $0x30] sm:$0xf] }
   0xa   :  { %183 = vmatpush.bf16.msra.mxu1 %v559_v21  ;;  %v40_v37 = vld [vmem:[%s1100_s1 + $0x20] sm:$0xff]  ;;  %v41_v38 = vld [vmem:[%s1100_s1 + $0x28] sm:$0xff]  ;;  %v547_v40 = vor.u32 %v708_v34, %v544_v35  ;;  %v707_v42 = vld [vmem:[%s1101_s2 + $0x34] sm:$0xf0] }
   0xb   :  { %196 = vmatpush.bf16.msra.mxu2 %v563_v22  ;;  %v706_v43 = vld [vmem:[%s1101_s2 + $0x34] sm:$0xf]  ;;  %v536_v44 = vld [vmem:[%s1101_s2 + $0x38] sm:$0xf0]  ;;  %v54_v45 = vpack.c.bf16 %v41_v38, %v40_v37  ;;  %v535_v48 = vor.u32 %v707_v42, %v534_v41  ;;  %v526_v50 = vld [vmem:[%s1101_s2 + $0x20] sm:$0xf] }
   0xc   :  { %62 = vmatpush.bf16.msra.mxu0 %v57_v12  ;;  %v38_v46 = vld [vmem:[%s1100_s1 + $0x10] sm:$0xff]  ;;  %v39_v47 = vld [vmem:[%s1100_s1 + $0x18] sm:$0xff]  ;;  %v539_v49 = vor.u32 %v706_v43, %v536_v44  ;;  %v705_v51 = vld [vmem:[%s1101_s2 + $0x24] sm:$0xf0] }
   0xd   :  { %v704_v52 = vld [vmem:[%s1101_s2 + $0x24] sm:$0xf]  ;;  %v528_v53 = vld [vmem:[%s1101_s2 + $0x28] sm:$0xf0]  ;;  %v53_v54 = vpack.c.bf16 %v39_v47, %v38_v46  ;;  %v527_v57 = vor.u32 %v705_v51, %v526_v50  ;;  %v518_v59 = vld [vmem:[%s1101_s2 + $0x10] sm:$0xf] }
   0xe   :  { %184 = vmatpush.bf16.msra.mxu1 %v551_v30  ;;  %v36_v55 = vld [vmem:[%s1100_s1] sm:$0xff]  ;;  %v37_v56 = vld [vmem:[%s1100_s1 + $0x8] sm:$0xff]  ;;  %v531_v58 = vor.u32 %v704_v52, %v528_v53  ;;  %v703_v60 = vld [vmem:[%s1101_s2 + $0x14] sm:$0xf0] }
   0xf   :  { %197 = vmatpush.bf16.msra.mxu2 %v555_v31  ;;  %v702_v61 = vld [vmem:[%s1101_s2 + $0x14] sm:$0xf]  ;;  %v520_v62 = vld [vmem:[%s1101_s2 + $0x18] sm:$0xf0]  ;;  %v52_v63 = vpack.c.bf16 %v37_v56, %v36_v55  ;;  %v519_v0 = vor.u32 %v703_v60, %v518_v59  ;;  %v35_v2 = vld [vmem:[%s1102_s0] sm:$0xf] }
  0x10   :  { %63 = vmatpush.bf16.msra.mxu0 %v56_v27  ;;  %v523_v1 = vor.u32 %v702_v61, %v520_v62  ;;  %v510_v3 = vld [vmem:[%s1101_s2] sm:$0xf]  ;;  %v701_v4 = vld [vmem:[%s1101_s2 + $0x4] sm:$0xf0]  ;;  %v700_v5 = vld [vmem:[%s1101_s2 + $0x4] sm:$0xf] }
  0x11   :  { %v511_v6 = vor.u32 %v701_v4, %v510_v3  ;;  %v512_v7 = vld [vmem:[%s1101_s2 + $0x8] sm:$0xf0]  ;;  %v723_v9 = vld [vmem:[%s1103_s4 + $0x38] sm:$0xff]  ;;  %v722_v11 = vld [vmem:[%s1103_s4 + $0x30] sm:$0xff] }
  0x12   :  { %185 = vmatpush.bf16.msra.mxu1 %v543_v39  ;;  %v515_v8 = vor.u32 %v700_v5, %v512_v7  ;;  %v731_v10 = vld [vmem:[%s1103_s4 + $0x78] sm:$0xff]  ;;  %344 = vmatpush.bf16.msra.mxu3 %v723_v9  ;;  %v730_v12 = vld [vmem:[%s1103_s4 + $0x70] sm:$0xff]  ;;  %v721_v13 = vld [vmem:[%s1103_s4 + $0x28] sm:$0xff] }
  0x13   :  { %198 = vmatpush.bf16.msra.mxu2 %v547_v40  ;;  %v729_v14 = vld [vmem:[%s1103_s4 + $0x68] sm:$0xff]  ;;  %v720_v15 = vld [vmem:[%s1103_s4 + $0x20] sm:$0xff]  ;;  %v719_v17 = vld [vmem:[%s1103_s4 + $0x18] sm:$0xff] }
  0x14   :  { %64 = vmatpush.bf16.msra.mxu0 %v55_v36  ;;  %v728_v16 = vld [vmem:[%s1103_s4 + $0x60] sm:$0xff]  ;;  %v727_v18 = vld [vmem:[%s1103_s4 + $0x58] sm:$0xff]  ;;  %v718_v19 = vld [vmem:[%s1103_s4 + $0x10] sm:$0xff] }
  0x15   :  { %v717_v23 = vld [vmem:[%s1103_s4 + $0x8] sm:$0xff]  ;;  %v726_v24 = vld [vmem:[%s1103_s4 + $0x50] sm:$0xff]  ;;  %v716_v25 = vld [vmem:[%s1103_s4] sm:$0xff] }
  0x16   :  { %186 = vmatpush.bf16.msra.mxu1 %v535_v48  ;;  %345 = vmatpush.bf16.msra.mxu3 %v722_v11  ;;  %v725_v26 = vld [vmem:[%s1103_s4 + $0x48] sm:$0xff]  ;;  %v724_v27 = vld [vmem:[%s1103_s4 + $0x40] sm:$0xff]  ;;  %v694_v28 = vld [vmem:[%s1105_s6 + $0x70] sm:$0xf] }
  0x17   :  { %199 = vmatpush.bf16.msra.mxu2 %v539_v49  ;;  %v747_v29 = vld [vmem:[%s1105_s6 + $0x74] sm:$0xf0]  ;;  %v746_v30 = vld [vmem:[%s1105_s6 + $0x74] sm:$0xf]  ;;  %v696_v32 = vld [vmem:[%s1105_s6 + $0x78] sm:$0xf0] }
  0x18   :  { %65 = vmatpush.bf16.msra.mxu0 %v54_v45  ;;  %v695_v31 = vor.u32 %v747_v29, %v694_v28  ;;  %v686_v33 = vld [vmem:[%s1105_s6 + $0x60] sm:$0xf]  ;;  %v745_v34 = vld [vmem:[%s1105_s6 + $0x64] sm:$0xf0]  ;;  %v699_v35 = vor.u32 %v746_v30, %v696_v32  ;;  %v744_v36 = vld [vmem:[%s1105_s6 + $0x64] sm:$0xf] }
  0x19   :  { %v688_v37 = vld [vmem:[%s1105_s6 + $0x68] sm:$0xf0]  ;;  %v687_v38 = vor.u32 %v745_v34, %v686_v33  ;;  %v678_v40 = vld [vmem:[%s1105_s6 + $0x50] sm:$0xf]  ;;  %v743_v41 = vld [vmem:[%s1105_s6 + $0x54] sm:$0xf0] }
  0x1a   :  { %187 = vmatpush.bf16.msra.mxu1 %v527_v57  ;;  %346 = vmatpush.bf16.msra.mxu3 %v721_v13  ;;  %v691_v39 = vor.u32 %v744_v36, %v688_v37  ;;  %v742_v42 = vld [vmem:[%s1105_s6 + $0x54] sm:$0xf]  ;;  %v680_v43 = vld [vmem:[%s1105_s6 + $0x58] sm:$0xf0]  ;;  %v679_v44 = vor.u32 %v743_v41, %v678_v40  ;;  %v670_v46 = vld [vmem:[%s1105_s6 + $0x40] sm:$0xf] }
  0x1b   :  { %200 = vmatpush.bf16.msra.mxu2 %v531_v58  ;;  %v683_v45 = vor.u32 %v742_v42, %v680_v43  ;;  %v741_v47 = vld [vmem:[%s1105_s6 + $0x44] sm:$0xf0]  ;;  %v740_v48 = vld [vmem:[%s1105_s6 + $0x44] sm:$0xf]  ;;  %v672_v49 = vld [vmem:[%s1105_s6 + $0x48] sm:$0xf0] }
  0x1c   :  { %66 = vmatpush.bf16.msra.mxu0 %v53_v54  ;;  %v671_v50 = vor.u32 %v741_v47, %v670_v46  ;;  %v96_v51 = vld [vmem:[%s1106_s3] sm:$0x3]  ;;  %v675_v52 = vor.u32 %v740_v48, %v672_v49  ;;  %v662_v53 = vld [vmem:[%s1105_s6 + $0x30] sm:$0xf]  ;;  %v739_v54 = vld [vmem:[%s1105_s6 + $0x34] sm:$0xf0] }
  0x1d   :  { %v738_v55 = vld [vmem:[%s1105_s6 + $0x34] sm:$0xf]  ;;  %v664_v56 = vld [vmem:[%s1105_s6 + $0x38] sm:$0xf0]  ;;  %v98_v57 = vperm.slane %v96_v51, 0  ;;  %v663_v58 = vor.u32 %v739_v54, %v662_v53  ;;  %v99_v5 = vperm.slane %v96_v51, 1 }
  0x1e   :  { %188 = vmatpush.bf16.msra.mxu1 %v519_v0  ;;  %347 = vmatpush.bf16.msra.mxu3 %v720_v15  ;;  %v667_v59 = vor.u32 %v738_v55, %v664_v56  ;;  %v654_v60 = vld [vmem:[%s1105_s6 + $0x20] sm:$0xf]  ;;  %v737_v61 = vld [vmem:[%s1105_s6 + $0x24] sm:$0xf0]  ;;  %v736_v62 = vld [vmem:[%s1105_s6 + $0x24] sm:$0xf] }
  0x1f   :  { %201 = vmatpush.bf16.msra.mxu2 %v523_v1  ;;  %v646_v13 = vld [vmem:[%s1105_s6 + $0x10] sm:$0xf]  ;;  %v734_v15 = vld [vmem:[%s1105_s6 + $0x14] sm:$0xf]  ;;  %v388_v34 = vld [vmem:[%s1107_s7] sm:$0x3] }
  0x20   :  { %67 = vmatpush.bf16.msra.mxu0 %v52_v63  ;;  %v656_v63 = vld [vmem:[%s1105_s6 + $0x28] sm:$0xf0] }
  0x21   :  { %v659_v3 = vor.u32 %v736_v62, %v656_v63 }
  0x22   :  { %189 = vmatpush.bf16.msra.mxu1 %v511_v6  ;;  %348 = vmatpush.bf16.msra.mxu3 %v719_v17  ;;  %v648_v17 = vld [vmem:[%s1105_s6 + $0x18] sm:$0xf0] }
  0x23   :  { %68 = vmatmul.bf16.vlgmr.msra.gmra.mxu0 %v35_v2  ;;  %202 = vmatpush.bf16.msra.mxu2 %v515_v8  ;;  %v655_v2 = vor.u32 %v737_v61, %v654_v60 }
  0x24   :  { %357 = vmatpush.bf16.msrb.mxu0 %v731_v10 }
  0x26   :  { %349 = vmatpush.bf16.msra.mxu3 %v718_v19  ;;  %474 = vmatpush.bf16.msrb.mxu1 %v695_v31  ;;  %v638_v19 = vld [vmem:[%s1105_s6] sm:$0xf] }
  0x27   :  { %487 = vmatpush.bf16.msrb.mxu2 %v699_v35  ;;  %v390_v35 = vperm.slane %v388_v34, 0 }
  0x28   :  { %358 = vmatpush.bf16.msrb.mxu0 %v730_v12 }
  0x2a   :  { %350 = vmatpush.bf16.msra.mxu3 %v717_v23  ;;  %475 = vmatpush.bf16.msrb.mxu1 %v687_v38  ;;  %v640_v23 = vld [vmem:[%s1105_s6 + $0x8] sm:$0xf0] }
  0x2b   :  { %488 = vmatpush.bf16.msrb.mxu2 %v691_v39  ;;  %v391_v39 = vperm.slane %v388_v34, 1 }
  0x2c   :  { %359 = vmatpush.bf16.msrb.mxu0 %v729_v14  ;;  %v735_v14 = vld [vmem:[%s1105_s6 + $0x14] sm:$0xf0] }
  0x2e   :  { %351 = vmatpush.bf16.msra.mxu3 %v716_v25  ;;  %476 = vmatpush.bf16.msrb.mxu1 %v679_v44  ;;  %v748_v25 = vld [vmem:[%s1104_s5] ss:$0 sm:$0xff] }
  0x2f   :  { %489 = vmatpush.bf16.msrb.mxu2 %v683_v45 }
  0x30   :  { %360 = vmatpush.bf16.msrb.mxu0 %v728_v16  ;;  %v647_v16 = vor.u32 %v735_v14, %v646_v13 }
  0x32   :  { %477 = vmatpush.bf16.msrb.mxu1 %v671_v50 }
  0x33   :  { %490 = vmatpush.bf16.msrb.mxu2 %v675_v52 }
  0x34   :  { %361 = vmatpush.bf16.msrb.mxu0 %v727_v18  ;;  %v651_v18 = vor.u32 %v734_v15, %v648_v17 }
  0x36   :  { %478 = vmatpush.bf16.msrb.mxu1 %v663_v58 }
  0x37   :  { %491 = vmatpush.bf16.msrb.mxu2 %v667_v59 }
  0x38   :  { %362 = vmatpush.bf16.msrb.mxu0 %v726_v24 }
  0x3a   :  { %479 = vmatpush.bf16.msrb.mxu1 %v655_v2 }
  0x3b   :  { %492 = vmatpush.bf16.msrb.mxu2 %v659_v3 }
  0x3c   :  { %363 = vmatpush.bf16.msrb.mxu0 %v725_v26 }
  0x3e   :  { %480 = vmatpush.bf16.msrb.mxu1 %v647_v16 }
  0x3f   :  { %493 = vmatpush.bf16.msrb.mxu2 %v651_v18 }
  0x40   :  { %364 = vmatpush.bf16.msrb.mxu0 %v724_v27 }
  0xa0   :  { %v69_v20 = vpop.f32.mrf.mxu0 }
  0xa1   :  { %v79_v21 = vpack.c.bf16 %v69_v20, %v69_v20  ;;  %v733_v20 = vld [vmem:[%s1105_s6 + $0x4] sm:$0xf0] }
  0xa3   :  { %190 = vmatmul.bf16.vlgmr.msra.gmra.mxu1 %v79_v21  ;;  %203 = vmatmul.bf16.vlgmr.msra.gmra.mxu2 %v79_v21  ;;  %v732_v21 = vld [vmem:[%s1105_s6 + $0x4] sm:$0xf] }
  0xa4   :  { %v643_v24 = vor.u32 %v732_v21, %v640_v23 }
  0xa6   :  { %494 = vmatpush.bf16.msrb.mxu2 %v643_v24 }
  0xa8   :  { %v71_v22 = vpop.f32.mrf.mxu0 }
  0xa9   :  { %v639_v22 = vor.u32 %v733_v20, %v638_v19 }
  0xab   :  { %481 = vmatpush.bf16.msrb.mxu1 %v639_v22 }
 0x120   :  { %v191_v0 = vpop.f32.mrf.mxu1 }
 0x121   :  { %v192_v1 = vadd.f32 %v191_v0, %v98_v57 }
 0x123   :  { %v208_v4 = vmax.f32 %v192_v1, 0.0 }
 0x125   :  { %v210_v6 = vpack.c.bf16 %v208_v4, %v208_v4 }
 0x126   :  { %v204_v7 = vpop.f32.mrf.mxu2 }
 0x127   :  { %v205_v8 = vadd.f32 %v204_v7, %v99_v5  ;;  %352 = vmatmul.bf16.vlgmr.msra.gmra.mxu3 %v210_v6 }
 0x128   :  { %v193_v9 = vpop.f32.mrf.mxu1 }
 0x129   :  { %v209_v10 = vmax.f32 %v205_v8, 0.0 }
 0x12b   :  { %v211_v11 = vpack.c.bf16 %v209_v10, %v209_v10 }
 0x12d   :  { %365 = vmatmul.bf16.vlgmr.msrb.gmra.mxu0 %v211_v11 }
 0x12e   :  { %v206_v12 = vpop.f32.mrf.mxu2 }
 0x1aa   :  { %v353_v26 = vpop.f32.mrf.mxu3  ;;  %v366_v27 = vpop.f32.mrf.mxu0 }
 0x1ab   :  { %v354_v28 = vadd.f32 %v748_v25, %v353_v26 }
 0x1ad   :  { %v367_v29 = vadd.f32 %v366_v27, %v354_v28 }
 0x1af   :  { %v370_v30 = vmax.f32 %v367_v29, 0.0 }
 0x1b1   :  { %v371_v31 = vpack.c.bf16 %v370_v30, %v370_v30 }
 0x1b2   :  { %v355_v32 = vpop.f32.mrf.mxu3  ;;  %v368_v33 = vpop.f32.mrf.mxu0 }
 0x1b3   :  { %482 = vmatmul.bf16.vlgmr.msrb.gmra.mxu1 %v371_v31  ;;  %495 = vmatmul.bf16.vlgmr.msrb.gmra.mxu2 %v371_v31 }
 0x230   :  { %v483_v36 = vpop.f32.mrf.mxu1 }
 0x231   :  { %v484_v37 = vadd.f32 %v483_v36, %v390_v35 }
 0x233   :  { %v500_v38 = vmax.f32 %v484_v37, 0.0 }
 0x235   :  { %502 = vst [vmem:[%s1108_s8] sm:$0xff] %v500_v38 }
 0x236   :  { %v496_v40 = vpop.f32.mrf.mxu2 }
 0x237   :  { %v497_v41 = vadd.f32 %v496_v40, %v391_v39 }
 0x238   :  { %v485_v42 = vpop.f32.mrf.mxu1 }
 0x239   :  { %v501_v43 = vmax.f32 %v497_v41, 0.0 }
 0x23b   :  { %503 = vst [vmem:[%s1108_s8 + $0x8] sm:$0xff] %v501_v43 }
 0x23e   :  { %v498_v44 = vpop.f32.mrf.mxu2 }

// kernel: classify_model_forward.6
= control target key start
LH: loop header
LB: loop body
LE: loop exit
PB: predicated region body
PF: predicated region fallthrough
CT: control target
= control target key end

     0   :  { %s4080_s3 = inlined_call_operand.vmem [shape: bf16[128,128], index: 3, kind: input, shape index: {}]   ;;  %s4081_s1 = inlined_call_operand.vmem [shape: f32[128,128], index: 1, kind: input, shape index: {}, may-alias: {1,2}]   ;;  %s4082_s7 = inlined_call_operand.vmem [shape: bf16[128,128], index: 7, kind: input, shape index: {}]   ;;  %s4083_s2 = inlined_call_operand.vmem [shape: f32[128,128], index: 2, kind: input, shape index: {}, may-alias: {1,2}]   ;;  %s4084_s0 = inlined_call_operand.vmem [shape: bf16[128,128], index: 0, kind: input, shape index: {}]   ;;  %s4085_s4 = inlined_call_operand.vmem [shape: bf16[128,128], index: 4, kind: input, shape index: {}]   ;;  %s4086_s8 = inlined_call_operand.vmem [shape: bf16[128,128], index: 8, kind: input, shape index: {}]   ;;  %s4087_s5 = inlined_call_operand.vmem [shape: bf16[128,128], index: 5, kind: input, shape index: {}]   ;;  %s4088_s6 = inlined_call_operand.vmem [shape: bf16[128,128], index: 6, kind: input, shape index: {}]   ;;  %s4089_s9 = inlined_call_operand.vmem [shape: bf16[128,128], index: 9, kind: input, shape index: {}]   ;;  %s4090_s11 = inlined_call_operand.vmem [shape: f32[1,128], index: 11, kind: input, shape index: {}]   ;;  %s4091_s12 = inlined_call_operand.vmem [shape: f32[1,128], index: 12, kind: input, shape index: {}]   ;;  %s4092_s10 = inlined_call_operand.vmem [shape: f32[1,128], index: 10, kind: input, shape index: {}]   ;;  %s4093_s13 = inlined_call_operand.vmem [shape: f32[1,128], index: 13, kind: input, shape index: {}]   ;;  %s4094_s14 = inlined_call_operand.vmem [shape: f32[128,128], index: 14, kind: output, shape index: {}]  }
   0x1   :  { %v2185_v0 = vld [vmem:[%s4080_s3 + $0x38] sm:$0xff]  ;;  %v2184_v1 = vld [vmem:[%s4080_s3 + $0x30] sm:$0xff]  ;;  %v2183_v2 = vld [vmem:[%s4080_s3 + $0x28] sm:$0xff] }
   0x2   :  { %155 = vmatpush.bf16.msra.mxu0 %v2185_v0  ;;  %v2182_v3 = vld [vmem:[%s4080_s3 + $0x20] sm:$0xff]  ;;  %v2181_v4 = vld [vmem:[%s4080_s3 + $0x18] sm:$0xff]  ;;  %v2180_v5 = vld [vmem:[%s4080_s3 + $0x10] sm:$0xff] }
   0x3   :  { %v2179_v6 = vld [vmem:[%s4080_s3 + $0x8] sm:$0xff]  ;;  %v2178_v7 = vld [vmem:[%s4080_s3] sm:$0xff]  ;;  %v69_v11 = vld [vmem:[%s4081_s1 + $0x10] sm:$0xff] }
   0x4   :  { %v67_v8 = vld [vmem:[%s4081_s1] sm:$0xff]  ;;  %v68_v9 = vld [vmem:[%s4081_s1 + $0x8] sm:$0xff]  ;;  %v70_v12 = vld [vmem:[%s4081_s1 + $0x18] sm:$0xff] }
   0x5   :  { %v83_v10 = vpack.c.bf16 %v68_v9, %v67_v8  ;;  %v84_v13 = vpack.c.bf16 %v70_v12, %v69_v11  ;;  %v71_v14 = vld [vmem:[%s4081_s1 + $0x20] sm:$0xff]  ;;  %v72_v15 = vld [vmem:[%s4081_s1 + $0x28] sm:$0xff]  ;;  %v73_v17 = vld [vmem:[%s4081_s1 + $0x30] sm:$0xff] }
   0x6   :  { %156 = vmatpush.bf16.msra.mxu0 %v2184_v1  ;;  %v85_v16 = vpack.c.bf16 %v72_v15, %v71_v14  ;;  %v74_v18 = vld [vmem:[%s4081_s1 + $0x38] sm:$0xff]  ;;  %v75_v20 = vld [vmem:[%s4081_s1 + $0x40] sm:$0xff]  ;;  %v76_v21 = vld [vmem:[%s4081_s1 + $0x48] sm:$0xff] }
   0x7   :  { %v86_v19 = vpack.c.bf16 %v74_v18, %v73_v17  ;;  %v87_v22 = vpack.c.bf16 %v76_v21, %v75_v20  ;;  %v77_v23 = vld [vmem:[%s4081_s1 + $0x50] sm:$0xff]  ;;  %v78_v24 = vld [vmem:[%s4081_s1 + $0x58] sm:$0xff]  ;;  %v79_v26 = vld [vmem:[%s4081_s1 + $0x60] sm:$0xff] }
   0x8   :  { %v88_v25 = vpack.c.bf16 %v78_v24, %v77_v23  ;;  %v80_v27 = vld [vmem:[%s4081_s1 + $0x68] sm:$0xff]  ;;  %v81_v29 = vld [vmem:[%s4081_s1 + $0x70] sm:$0xff]  ;;  %v82_v30 = vld [vmem:[%s4081_s1 + $0x78] sm:$0xff] }
   0x9   :  { %v89_v28 = vpack.c.bf16 %v80_v27, %v79_v26  ;;  %v90_v31 = vpack.c.bf16 %v82_v30, %v81_v29  ;;  %v2209_v45 = vld [vmem:[%s4082_s7 + $0x38] sm:$0xff]  ;;  %v2208_v46 = vld [vmem:[%s4082_s7 + $0x30] sm:$0xff]  ;;  %v2207_v48 = vld [vmem:[%s4082_s7 + $0x28] sm:$0xff] }
   0xa   :  { %157 = vmatpush.bf16.msra.mxu0 %v2183_v2  ;;  %504 = vmatpush.bf16.msra.mxu2 %v2209_v45  ;;  %v2206_v49 = vld [vmem:[%s4082_s7 + $0x20] sm:$0xff]  ;;  %v2205_v51 = vld [vmem:[%s4082_s7 + $0x18] sm:$0xff]  ;;  %v2204_v52 = vld [vmem:[%s4082_s7 + $0x10] sm:$0xff] }
   0xb   :  { %v2203_v55 = vld [vmem:[%s4082_s7 + $0x8] sm:$0xff]  ;;  %v2202_v56 = vld [vmem:[%s4082_s7] sm:$0xff]  ;;  %v2612_v0 = vld [vmem:[%s4083_s2 + $0x10] sm:$0xff] }
   0xc   :  { %v2597_v57 = vld [vmem:[%s4083_s2] sm:$0xff]  ;;  %v2602_v58 = vld [vmem:[%s4083_s2 + $0x8] sm:$0xff]  ;;  %v379_v1 = vld [vmem:[%s4083_s2 + $0x18] sm:$0xff] }
   0xd   :  { %v2606_v60 = vpack.c.bf16 %v2602_v58, %v2597_v57  ;;  %v381_v8 = vld [vmem:[%s4083_s2 + $0x28] sm:$0xff]  ;;  %v382_v11 = vld [vmem:[%s4083_s2 + $0x30] sm:$0xff]  ;;  %v383_v12 = vld [vmem:[%s4083_s2 + $0x38] sm:$0xff] }
   0xe   :  { %158 = vmatpush.bf16.msra.mxu0 %v2182_v3  ;;  %505 = vmatpush.bf16.msra.mxu2 %v2208_v46  ;;  %v2618_v3 = vpack.c.bf16 %v379_v1, %v2612_v0  ;;  %v2188_v14 = vld [vmem:[%s4084_s0 + $0x10] sm:$0xff]  ;;  %v384_v15 = vld [vmem:[%s4083_s2 + $0x40] sm:$0xff]  ;;  %v2189_v18 = vld [vmem:[%s4084_s0 + $0x18] sm:$0xff] }
   0xf   :  { %v387_v20 = vld [vmem:[%s4083_s2 + $0x58] sm:$0xff]  ;;  %v388_v23 = vld [vmem:[%s4083_s2 + $0x60] sm:$0xff]  ;;  %v389_v24 = vld [vmem:[%s4083_s2 + $0x68] sm:$0xff] }
  0x10   :  { %v2225_v26 = vld [vmem:[%s4086_s8 + $0x38] sm:$0xff]  ;;  %v2200_v29 = vld [vmem:[%s4085_s4 + $0x30] sm:$0xff]  ;;  %v2210_v1 = vld [vmem:[%s4087_s5] sm:$0xff] }
  0x11   :  { %v2217_v27 = vld [vmem:[%s4087_s5 + $0x38] sm:$0xff]  ;;  %v2224_v30 = vld [vmem:[%s4086_s8 + $0x30] sm:$0xff] }
  0x12   :  { %159 = vmatpush.bf16.msra.mxu0 %v2181_v4  ;;  %506 = vmatpush.bf16.msra.mxu2 %v2207_v48  ;;  %v2197_v46 = vld [vmem:[%s4085_s4 + $0x18] sm:$0xff] }
  0x13   :  { %v2213_v48 = vld [vmem:[%s4087_s5 + $0x18] sm:$0xff] }
  0x16   :  { %160 = vmatpush.bf16.msra.mxu0 %v2180_v5  ;;  %507 = vmatpush.bf16.msra.mxu2 %v2206_v49  ;;  %v2229_v49 = vld [vmem:[%s4088_s6 + $0x18] sm:$0xff] }
  0x1a   :  { %161 = vmatpush.bf16.msra.mxu0 %v2179_v6  ;;  %508 = vmatpush.bf16.msra.mxu2 %v2205_v51  ;;  %v2186_v6 = vld [vmem:[%s4084_s0] sm:$0xff]  ;;  %v2220_v51 = vld [vmem:[%s4086_s8 + $0x10] sm:$0xff] }
  0x1e   :  { %162 = vmatpush.bf16.msra.mxu0 %v2178_v7  ;;  %509 = vmatpush.bf16.msra.mxu2 %v2204_v52  ;;  %v380_v7 = vld [vmem:[%s4083_s2 + $0x20] sm:$0xff]  ;;  %v2212_v52 = vld [vmem:[%s4087_s5 + $0x10] sm:$0xff] }
  0x1f   :  { %v2630_v9 = vpack.c.bf16 %v381_v8, %v380_v7 }
  0x21   :  { %163 = vmatmul.bf16.vlgmr.msra.gmra.mxu0 %v83_v10  ;;  %v2187_v10 = vld [vmem:[%s4084_s0 + $0x8] sm:$0xff] }
  0x22   :  { %510 = vmatpush.bf16.msra.mxu2 %v2203_v55  ;;  %1054 = vmatpush.bf16.msrb.mxu0 %v2225_v26  ;;  %v2195_v55 = vld [vmem:[%s4085_s4 + $0x8] sm:$0xff] }
  0x26   :  { %511 = vmatpush.bf16.msra.mxu2 %v2202_v56  ;;  %1055 = vmatpush.bf16.msrb.mxu0 %v2224_v30  ;;  %v2219_v56 = vld [vmem:[%s4086_s8 + $0x8] sm:$0xff] }
  0x29   :  { %512 = vmatmul.bf16.vlgmr.msra.gmra.mxu2 %v2606_v60 }
  0x31   :  { %168 = vmatmul.bf16.gmra.mxu0 %v84_v13  ;;  %v2642_v13 = vpack.c.bf16 %v383_v12, %v382_v11  ;;  %v2239_v11 = vld [vmem:[%s4089_s9 + $0x28] sm:$0xff] }
  0x39   :  { %517 = vmatmul.bf16.gmra.mxu2 %v2618_v3 }
  0x41   :  { %173 = vmatmul.bf16.gmra.mxu0 %v85_v16  ;;  %v385_v16 = vld [vmem:[%s4083_s2 + $0x48] sm:$0xff] }
  0x42   :  { %v2654_v17 = vpack.c.bf16 %v385_v16, %v384_v15  ;;  %v2238_v16 = vld [vmem:[%s4089_s9 + $0x20] sm:$0xff] }
  0x49   :  { %522 = vmatmul.bf16.gmra.mxu2 %v2630_v9 }
  0x51   :  { %178 = vmatmul.bf16.gmra.mxu0 %v86_v19  ;;  %v386_v19 = vld [vmem:[%s4083_s2 + $0x50] sm:$0xff] }
  0x52   :  { %v2666_v21 = vpack.c.bf16 %v387_v20, %v386_v19 }
  0x59   :  { %527 = vmatmul.bf16.gmra.mxu2 %v2642_v13 }
  0x61   :  { %183 = vmatmul.bf16.gmra.mxu0 %v87_v22  ;;  %v2190_v22 = vld [vmem:[%s4084_s0 + $0x20] sm:$0xff] }
  0x69   :  { %532 = vmatmul.bf16.gmra.mxu2 %v2654_v17 }
  0x71   :  { %188 = vmatmul.bf16.gmra.mxu0 %v88_v25  ;;  %v2201_v25 = vld [vmem:[%s4085_s4 + $0x38] sm:$0xff] }
  0x72   :  { %601 = vmatpush.bf16.msra.mxu3 %v2201_v25 }
  0x76   :  { %602 = vmatpush.bf16.msra.mxu3 %v2200_v29  ;;  %v2236_v29 = vld [vmem:[%s4089_s9 + $0x10] sm:$0xff] }
  0x79   :  { %537 = vmatmul.bf16.gmra.mxu2 %v2666_v21 }
  0x81   :  { %193 = vmatmul.bf16.gmra.mxu0 %v89_v28  ;;  %v2233_v28 = vld [vmem:[%s4088_s6 + $0x38] sm:$0xff] }
  0x82   :  { %1592 = vmatpush.bf16.msrb.mxu2 %v2233_v28 }
  0x91   :  { %198 = vmatmul.bf16.gmra.mxu0 %v90_v31  ;;  %v2216_v31 = vld [vmem:[%s4087_s5 + $0x30] sm:$0xff] }
  0x9e   :  { %v164_v32 = vpop.f32.mrf.mxu0 }
  0xa6   :  { %v166_v33 = vpop.f32.mrf.mxu0 }
  0xa7   :  { %v236_v5 = vpack.c.bf16 %v166_v33, %v164_v32  ;;  %v2699_v32 = vpack.c.bf16 %v389_v24, %v388_v23  ;;  %v2232_v33 = vld [vmem:[%s4088_s6 + $0x30] sm:$0xff]  ;;  %v2237_v24 = vld [vmem:[%s4089_s9 + $0x18] sm:$0xff] }
  0xa8   :  { %1593 = vmatpush.bf16.msrb.mxu2 %v2232_v33 }
  0xa9   :  { %542 = vmatmul.bf16.gmra.mxu2 %v2699_v32 }
  0xae   :  { %v169_v34 = vpop.f32.mrf.mxu0 }
  0xb6   :  { %v171_v35 = vpop.f32.mrf.mxu0 }
  0xb7   :  { %v237_v4 = vpack.c.bf16 %v171_v35, %v169_v34  ;;  %v2191_v34 = vld [vmem:[%s4084_s0 + $0x28] sm:$0xff] }
  0xb8   :  { %v2199_v35 = vld [vmem:[%s4085_s4 + $0x28] sm:$0xff] }
  0xb9   :  { %603 = vmatpush.bf16.msra.mxu3 %v2199_v35 }
  0xbe   :  { %v174_v36 = vpop.f32.mrf.mxu0 }
  0xc6   :  { %v176_v37 = vpop.f32.mrf.mxu0 }
  0xc7   :  { %v238_v2 = vpack.c.bf16 %v176_v37, %v174_v36  ;;  %v2223_v36 = vld [vmem:[%s4086_s8 + $0x28] sm:$0xff] }
  0xc8   :  { %v2215_v37 = vld [vmem:[%s4087_s5 + $0x28] sm:$0xff]  ;;  %1056 = vmatpush.bf16.msrb.mxu0 %v2223_v36 }
  0xc9   :  { %v2235_v36 = vld [vmem:[%s4089_s9 + $0x8] sm:$0xff] }
  0xce   :  { %v179_v38 = vpop.f32.mrf.mxu0 }
  0xd6   :  { %v181_v39 = vpop.f32.mrf.mxu0 }
  0xd7   :  { %v239_v63 = vpack.c.bf16 %v181_v39, %v179_v38  ;;  %v2231_v38 = vld [vmem:[%s4088_s6 + $0x28] sm:$0xff]  ;;  %v2198_v39 = vld [vmem:[%s4085_s4 + $0x20] sm:$0xff] }
  0xd8   :  { %1594 = vmatpush.bf16.msrb.mxu2 %v2231_v38  ;;  %604 = vmatpush.bf16.msra.mxu3 %v2198_v39 }
  0xdc   :  { %605 = vmatpush.bf16.msra.mxu3 %v2197_v46 }
  0xde   :  { %v184_v40 = vpop.f32.mrf.mxu0 }
  0xe6   :  { %v186_v41 = vpop.f32.mrf.mxu0 }
  0xe7   :  { %v240_v62 = vpack.c.bf16 %v186_v41, %v184_v40  ;;  %v2222_v40 = vld [vmem:[%s4086_s8 + $0x20] sm:$0xff]  ;;  %v390_v41 = vld [vmem:[%s4083_s2 + $0x70] sm:$0xff] }
  0xe8   :  { %1057 = vmatpush.bf16.msrb.mxu0 %v2222_v40 }
  0xee   :  { %v189_v42 = vpop.f32.mrf.mxu0 }
  0xf6   :  { %v191_v43 = vpop.f32.mrf.mxu0 }
  0xf7   :  { %v241_v61 = vpack.c.bf16 %v191_v43, %v189_v42  ;;  %v2214_v42 = vld [vmem:[%s4087_s5 + $0x20] sm:$0xff] }
  0xf8   :  { %v2230_v43 = vld [vmem:[%s4088_s6 + $0x20] sm:$0xff] }
  0xf9   :  { %1595 = vmatpush.bf16.msrb.mxu2 %v2230_v43 }
  0xfd   :  { %1596 = vmatpush.bf16.msrb.mxu2 %v2229_v49 }
  0xfe   :  { %v194_v44 = vpop.f32.mrf.mxu0 }
 0x106   :  { %v196_v47 = vpop.f32.mrf.mxu0 }
 0x107   :  { %v242_v59 = vpack.c.bf16 %v196_v47, %v194_v44  ;;  %v391_v44 = vld [vmem:[%s4083_s2 + $0x78] sm:$0xff] }
 0x108   :  { %v2738_v45 = vpack.c.bf16 %v391_v44, %v390_v41  ;;  %v2221_v47 = vld [vmem:[%s4086_s8 + $0x18] sm:$0xff] }
 0x109   :  { %1058 = vmatpush.bf16.msrb.mxu0 %v2221_v47 }
 0x10a   :  { %547 = vmatmul.bf16.gmra.mxu2 %v2738_v45 }
 0x10d   :  { %1059 = vmatpush.bf16.msrb.mxu0 %v2220_v51 }
 0x10e   :  { %v199_v50 = vpop.f32.mrf.mxu0 }
 0x111   :  { %1060 = vmatpush.bf16.msrb.mxu0 %v2219_v56 }
 0x116   :  { %v201_v53 = vpop.f32.mrf.mxu0 }
 0x117   :  { %v243_v54 = vpack.c.bf16 %v201_v53, %v199_v50  ;;  %v2196_v50 = vld [vmem:[%s4085_s4 + $0x10] sm:$0xff] }
 0x118   :  { %v2192_v53 = vld [vmem:[%s4084_s0 + $0x30] sm:$0xff]  ;;  %606 = vmatpush.bf16.msra.mxu3 %v2196_v50 }
 0x119   :  { %292 = vmatpush.bf16.msra.mxu1 %v243_v54  ;;  %v2228_v54 = vld [vmem:[%s4088_s6 + $0x10] sm:$0xff] }
 0x11a   :  { %1597 = vmatpush.bf16.msrb.mxu2 %v2228_v54 }
 0x11c   :  { %607 = vmatpush.bf16.msra.mxu3 %v2195_v55 }
 0x11d   :  { %293 = vmatpush.bf16.msra.mxu1 %v242_v59  ;;  %v2211_v59 = vld [vmem:[%s4087_s5 + $0x8] sm:$0xff] }
 0x121   :  { %294 = vmatpush.bf16.msra.mxu1 %v241_v61  ;;  %v2227_v61 = vld [vmem:[%s4088_s6 + $0x8] sm:$0xff] }
 0x122   :  { %1598 = vmatpush.bf16.msrb.mxu2 %v2227_v61 }
 0x125   :  { %295 = vmatpush.bf16.msra.mxu1 %v240_v62  ;;  %v2194_v62 = vld [vmem:[%s4085_s4] sm:$0xff] }
 0x126   :  { %608 = vmatpush.bf16.msra.mxu3 %v2194_v62 }
 0x129   :  { %296 = vmatpush.bf16.msra.mxu1 %v239_v63  ;;  %v2218_v63 = vld [vmem:[%s4086_s8] sm:$0xff] }
 0x12a   :  { %1061 = vmatpush.bf16.msrb.mxu0 %v2218_v63 }
 0x12d   :  { %297 = vmatpush.bf16.msra.mxu1 %v238_v2  ;;  %v2226_v2 = vld [vmem:[%s4088_s6] sm:$0xff]  ;;  %1062 = vmatmul.bf16.vlgmr.msrb.gmra.mxu0 %v2606_v60 }
 0x12e   :  { %1599 = vmatpush.bf16.msrb.mxu2 %v2226_v2 }
 0x131   :  { %298 = vmatpush.bf16.msra.mxu1 %v237_v4  ;;  %v2241_v4 = vld [vmem:[%s4089_s9 + $0x38] sm:$0xff] }
 0x132   :  { %1709 = vmatpush.bf16.msrb.mxu3 %v2241_v4 }
 0x135   :  { %299 = vmatpush.bf16.msra.mxu1 %v236_v5  ;;  %v2193_v5 = vld [vmem:[%s4084_s0 + $0x38] sm:$0xff] }
 0x138   :  { %300 = vmatmul.bf16.vlgmr.msra.gmra.mxu1 %v2186_v6  ;;  %v2240_v6 = vld [vmem:[%s4089_s9 + $0x30] sm:$0xff] }
 0x139   :  { %1151 = vmatpush.bf16.msrb.mxu1 %v2217_v27  ;;  %1710 = vmatpush.bf16.msrb.mxu3 %v2240_v6 }
 0x13d   :  { %1152 = vmatpush.bf16.msrb.mxu1 %v2216_v31  ;;  %1067 = vmatmul.bf16.gmra.mxu0 %v2618_v3 }
 0x13e   :  { %1711 = vmatpush.bf16.msrb.mxu3 %v2239_v11 }
 0x141   :  { %1153 = vmatpush.bf16.msrb.mxu1 %v2215_v37 }
 0x142   :  { %1712 = vmatpush.bf16.msrb.mxu3 %v2238_v16 }
 0x145   :  { %1154 = vmatpush.bf16.msrb.mxu1 %v2214_v42  ;;  %v2234_v42 = vld [vmem:[%s4089_s9] sm:$0xff] }
 0x146   :  { %1713 = vmatpush.bf16.msrb.mxu3 %v2237_v24 }
 0x148   :  { %305 = vmatmul.bf16.gmra.mxu1 %v2187_v10 }
 0x149   :  { %1155 = vmatpush.bf16.msrb.mxu1 %v2213_v48 }
 0x14a   :  { %1714 = vmatpush.bf16.msrb.mxu3 %v2236_v29 }
 0x14d   :  { %1156 = vmatpush.bf16.msrb.mxu1 %v2212_v52  ;;  %1072 = vmatmul.bf16.gmra.mxu0 %v2630_v9 }
 0x14e   :  { %1715 = vmatpush.bf16.msrb.mxu3 %v2235_v36 }
 0x151   :  { %1157 = vmatpush.bf16.msrb.mxu1 %v2211_v59 }
 0x152   :  { %1716 = vmatpush.bf16.msrb.mxu3 %v2234_v42 }
 0x155   :  { %1158 = vmatpush.bf16.msrb.mxu1 %v2210_v1 }
 0x158   :  { %310 = vmatmul.bf16.gmra.mxu1 %v2188_v14 }
 0x15d   :  { %1077 = vmatmul.bf16.gmra.mxu0 %v2642_v13 }
 0x168   :  { %315 = vmatmul.bf16.gmra.mxu1 %v2189_v18  ;;  %v2811_v18 = vpop.f32.mrf.mxu2 }
 0x16d   :  { %1082 = vmatmul.bf16.gmra.mxu0 %v2654_v17 }
 0x178   :  { %320 = vmatmul.bf16.gmra.mxu1 %v2190_v22  ;;  %v2813_v22 = vpop.f32.mrf.mxu2 }
 0x17d   :  { %1087 = vmatmul.bf16.gmra.mxu0 %v2666_v21 }
 0x180   :  { %v2819_v26 = vpop.f32.mrf.mxu2 }
 0x188   :  { %325 = vmatmul.bf16.gmra.mxu1 %v2191_v34  ;;  %v2825_v30 = vpop.f32.mrf.mxu2 }
 0x18d   :  { %1092 = vmatmul.bf16.gmra.mxu0 %v2699_v32 }
 0x190   :  { %v2827_v33 = vpop.f32.mrf.mxu2 }
 0x198   :  { %330 = vmatmul.bf16.gmra.mxu1 %v2192_v53  ;;  %v2833_v38 = vpop.f32.mrf.mxu2 }
 0x19d   :  { %1097 = vmatmul.bf16.gmra.mxu0 %v2738_v45 }
 0x1a0   :  { %v2835_v41 = vpop.f32.mrf.mxu2 }
 0x1a8   :  { %335 = vmatmul.bf16.gmra.mxu1 %v2193_v5  ;;  %v2841_v44 = vpop.f32.mrf.mxu2 }
 0x1aa   :  { %v1063_v2 = vpop.f32.mrf.mxu0 }
 0x1b0   :  { %v2843_v48 = vpop.f32.mrf.mxu2 }
 0x1b2   :  { %v1065_v6 = vpop.f32.mrf.mxu0 }
 0x1b5   :  { %v301_v7 = vpop.f32.mrf.mxu1 }
 0x1b8   :  { %v2845_v51 = vpop.f32.mrf.mxu2 }
 0x1ba   :  { %v1068_v11 = vpop.f32.mrf.mxu0 }
 0x1bd   :  { %v303_v8 = vpop.f32.mrf.mxu1 }
 0x1be   :  { %v416_v10 = vpack.c.bf16 %v303_v8, %v301_v7 }
 0x1c0   :  { %609 = vmatmul.bf16.vlgmr.msra.gmra.mxu3 %v416_v10  ;;  %1159 = vmatmul.bf16.vlgmr.msrb.gmra.mxu1 %v416_v10  ;;  %v2847_v53 = vpop.f32.mrf.mxu2 }
 0x1c1   :  { %1600 = vmatmul.bf16.vlgmr.msrb.gmra.mxu2 %v416_v10 }
 0x1c2   :  { %v1070_v24 = vpop.f32.mrf.mxu0 }
 0x1c5   :  { %v306_v12 = vpop.f32.mrf.mxu1 }
 0x1c8   :  { %v2850_v54 = vpop.f32.mrf.mxu2 }
 0x1cd   :  { %v308_v14 = vpop.f32.mrf.mxu1 }
 0x1ce   :  { %v417_v15 = vpack.c.bf16 %v308_v14, %v306_v12 }
 0x1d0   :  { %614 = vmatmul.bf16.gmra.mxu3 %v417_v15  ;;  %1164 = vmatmul.bf16.gmra.mxu1 %v417_v15  ;;  %v2852_v59 = vpop.f32.mrf.mxu2 }
 0x1d1   :  { %1605 = vmatmul.bf16.gmra.mxu2 %v417_v15  ;;  %4095 = vst [vmem:[#allocation3_spill] sm:$0xff] %v2852_v59 }
 0x1d5   :  { %v311_v19 = vpop.f32.mrf.mxu1 }
 0x1d8   :  { %v2855_v62 = vpop.f32.mrf.mxu2 }
 0x1d9   :  { %4096 = vst [vmem:[#allocation4_spill] sm:$0xff] %v2855_v62 }
 0x1dd   :  { %v313_v20 = vpop.f32.mrf.mxu1 }
 0x1de   :  { %v418_v23 = vpack.c.bf16 %v313_v20, %v311_v19 }
 0x1e0   :  { %619 = vmatmul.bf16.gmra.mxu3 %v418_v23  ;;  %1169 = vmatmul.bf16.gmra.mxu1 %v418_v23  ;;  %v2859_v1 = vpop.f32.mrf.mxu2 }
 0x1e1   :  { %1610 = vmatmul.bf16.gmra.mxu2 %v418_v23  ;;  %4097 = vst [vmem:[#allocation5_spill] sm:$0xff] %v2859_v1 }
 0x1e5   :  { %v316_v25 = vpop.f32.mrf.mxu1 }
 0x1e8   :  { %v2864_v5 = vpop.f32.mrf.mxu2 }
 0x1e9   :  { %4098 = vst [vmem:[#allocation6_spill] sm:$0xff] %v2864_v5 }
 0x1ed   :  { %v318_v27 = vpop.f32.mrf.mxu1 }
 0x1ee   :  { %v419_v28 = vpack.c.bf16 %v318_v27, %v316_v25 }
 0x1f0   :  { %624 = vmatmul.bf16.gmra.mxu3 %v419_v28  ;;  %1174 = vmatmul.bf16.gmra.mxu1 %v419_v28 }
 0x1f1   :  { %1615 = vmatmul.bf16.gmra.mxu2 %v419_v28 }
 0x1f5   :  { %v321_v31 = vpop.f32.mrf.mxu1 }
 0x1fd   :  { %v323_v34 = vpop.f32.mrf.mxu1 }
 0x1fe   :  { %v420_v35 = vpack.c.bf16 %v323_v34, %v321_v31 }
 0x200   :  { %629 = vmatmul.bf16.gmra.mxu3 %v420_v35  ;;  %1179 = vmatmul.bf16.gmra.mxu1 %v420_v35 }
 0x201   :  { %1620 = vmatmul.bf16.gmra.mxu2 %v420_v35 }
 0x205   :  { %v326_v37 = vpop.f32.mrf.mxu1 }
 0x20d   :  { %v328_v39 = vpop.f32.mrf.mxu1 }
 0x20e   :  { %v421_v40 = vpack.c.bf16 %v328_v39, %v326_v37 }
 0x210   :  { %634 = vmatmul.bf16.gmra.mxu3 %v421_v40  ;;  %1184 = vmatmul.bf16.gmra.mxu1 %v421_v40 }
 0x211   :  { %1625 = vmatmul.bf16.gmra.mxu2 %v421_v40  ;;  %v1073_v40 = vpop.f32.mrf.mxu0 }
 0x215   :  { %v331_v43 = vpop.f32.mrf.mxu1 }
 0x21d   :  { %v333_v46 = vpop.f32.mrf.mxu1 }
 0x21e   :  { %v422_v47 = vpack.c.bf16 %v333_v46, %v331_v43 }
 0x220   :  { %639 = vmatmul.bf16.gmra.mxu3 %v422_v47  ;;  %1189 = vmatmul.bf16.gmra.mxu1 %v422_v47 }
 0x221   :  { %1630 = vmatmul.bf16.gmra.mxu2 %v422_v47 }
 0x225   :  { %v336_v49 = vpop.f32.mrf.mxu1 }
 0x22d   :  { %v338_v50 = vpop.f32.mrf.mxu1 }
 0x22e   :  { %v423_v52 = vpack.c.bf16 %v338_v50, %v336_v49 }
 0x230   :  { %644 = vmatmul.bf16.gmra.mxu3 %v423_v52  ;;  %1194 = vmatmul.bf16.gmra.mxu1 %v423_v52 }
 0x231   :  { %1635 = vmatmul.bf16.gmra.mxu2 %v423_v52 }
 0x23d   :  { %v1160_v4 = vpop.f32.mrf.mxu1 }
 0x23e   :  { %v1161_v14 = vadd.f32 %v1160_v4, %v1063_v2 }
 0x240   :  { %1717 = vmatmul.bf16.vlgmr.msrb.gmra.mxu3 %v2606_v60 }
 0x243   :  { %v610_v55 = vpop.f32.mrf.mxu3 }
 0x244   :  { %v2871_v10 = vpop.f32.mrf.mxu2  ;;  %v611_v19 = vadd.f32 %v610_v55, %v2811_v18 }
 0x245   :  { %v1162_v7 = vpop.f32.mrf.mxu1 }
 0x246   :  { %v1163_v25 = vadd.f32 %v1162_v7, %v1065_v6 }
 0x24b   :  { %v612_v56 = vpop.f32.mrf.mxu3 }
 0x24c   :  { %v2887_v23 = vpop.f32.mrf.mxu2  ;;  %v613_v29 = vadd.f32 %v612_v56, %v2813_v22 }
 0x24d   :  { %v1165_v12 = vpop.f32.mrf.mxu1 }
 0x250   :  { %1722 = vmatmul.bf16.gmra.mxu3 %v2618_v3 }
 0x253   :  { %v615_v61 = vpop.f32.mrf.mxu3 }
 0x254   :  { %v2896_v39 = vpop.f32.mrf.mxu2  ;;  %v616_v22 = vadd.f32 %v615_v61, %v2819_v26  ;;  %v1075_v26 = vpop.f32.mrf.mxu0 }
 0x255   :  { %v1167_v27 = vpop.f32.mrf.mxu1 }
 0x256   :  { %v1168_v55 = vadd.f32 %v1167_v27, %v1070_v24 }
 0x25b   :  { %v2857_v63 = vpop.f32.mrf.mxu3 }
 0x25c   :  { %v2909_v6 = vpop.f32.mrf.mxu2 }
 0x25d   :  { %v1170_v43 = vpop.f32.mrf.mxu1 }
 0x260   :  { %1727 = vmatmul.bf16.gmra.mxu3 %v2630_v9  ;;  %v2876_v9 = vld [vmem:[%s4090_s11] ss:$0 sm:$0xff] }
 0x261   :  { %v1204_v15 = vadd.f32 %v2876_v9, %v1161_v14  ;;  %v1205_v18 = vadd.f32 %v2876_v9, %v1163_v25  ;;  %v1171_v25 = vadd.f32 %v1170_v43, %v1073_v40 }
 0x263   :  { %v2862_v60 = vpop.f32.mrf.mxu3  ;;  %v2098_v20 = vmul.f32 -1.442695, %v1204_v15  ;;  %v2099_v36 = vmul.f32 -1.442695, %v1205_v18 }
 0x265   :  { %2246 = vpow2.f32 %v2098_v20 }
 0x26b   :  { %v2866_v8 = vpop.f32.mrf.mxu3  ;;  %v2247_v37 = vpop.eup %2246 }
 0x26c   :  { %v2898_v46 = vadd.f32 1.0, %v2247_v37  ;;  %v1078_v37 = vpop.f32.mrf.mxu0 }
 0x26e   :  { %vm1289_vm0 = vweird.f32 %v2898_v46 }
 0x270   :  { %1732 = vmatmul.bf16.gmra.mxu3 %v2642_v13  ;;  %v2885_v13 = vld [vmem:[%s4092_s10] ss:$0 sm:$0xff] }
 0x271   :  { %v654_v28 = vadd.f32 %v2885_v13, %v611_v19  ;;  %v655_v35 = vadd.f32 %v2885_v13, %v613_v29  ;;  %v656_v52 = vadd.f32 %v2885_v13, %v616_v22 }
 0x273   :  { %v2869_v3 = vpop.f32.mrf.mxu3  ;;  %v2018_v34 = vmul.f32 -1.442695, %v654_v28  ;;  %v2019_v42 = vmul.f32 -1.442695, %v655_v35  ;;  %v2020_v7 = vmul.f32 -1.442695, %v656_v52 }
 0x274   :  { %v1293_v52 = vand.u32 2147483647, %v2898_v46 }
 0x275   :  { %2248 = vpow2.f32 %v2018_v34 }
 0x276   :  { %2250 = vpow2.f32 %v2099_v36  ;;  %v2938_v36 = vpop.f32.mrf.mxu2  ;;  %vm2969_vm2 = vcmp.eq.f32.partialorder %v1293_v52, 8.507059e+37 }
 0x277   :  { %2252 = vpow2.f32 %v2019_v42  ;;  %v1295_v42 = vand.u32 2147483648, %v2898_v46 }
 0x278   :  { %2254 = vrcp.f32 %v2898_v46 }
 0x27b   :  { %v2879_v16 = vpop.f32.mrf.mxu3  ;;  %v2249_v50 = vpop.eup %2248 }
 0x27c   :  { %v2251_v56 = vpop.eup %2250  ;;  %v2907_v4 = vadd.f32 1.0, %v2249_v50 }
 0x27d   :  { %v2253_v61 = vpop.eup %2252  ;;  %v2914_v15 = vadd.f32 1.0, %v2251_v56 }
 0x27e   :  { %v2916_v19 = vpop.eup %2254  ;;  %v2921_v20 = vadd.f32 1.0, %v2253_v61  ;;  %vm739_vm3 = vweird.f32 %v2907_v4  ;;  %v2991_v52 = vpop.f32.mrf.mxu2 }
 0x27f   :  { %v1285_v27 = vmul.f32 %v2916_v19, %v2898_v46  ;;  %vm1290_vm1 = vweird.f32 %v2916_v19  ;;  %vm1304_vm5 = vweird.f32 %v2914_v15 }
 0x280   :  { %1737 = vmatmul.bf16.gmra.mxu3 %v2654_v17  ;;  %v1166_v17 = vadd.f32 %v1165_v12, %v1068_v11  ;;  %v1207_v11 = vadd.f32 %v2876_v9, %v1168_v55  ;;  %v1172_v12 = vpop.f32.mrf.mxu1  ;;  %vm2999_vm4 = vmor %vm1289_vm0, %vm1290_vm1  ;;  %vm754_vm9 = vweird.f32 %v2921_v20 }
 0x281   :  { %v1286_v35 = vsub.f32 1.0, %v1285_v27  ;;  %v1173_v43 = vadd.f32 %v1172_v12, %v1075_v26  ;;  %v1296_v12 = vor.u32 1.1754944e-38, %v1295_v42 }
 0x282   :  { %v1206_v49 = vadd.f32 %v2876_v9, %v1166_v17  ;;  %v2101_v24 = vmul.f32 -1.442695, %v1207_v11 }
 0x283   :  { %v2893_v31 = vpop.f32.mrf.mxu3 }
 0x284   :  { %v2100_v2 = vmul.f32 -1.442695, %v1206_v49 }
 0x286   :  { %2256 = vpow2.f32 %v2100_v2 }
 0x287   :  { %2258 = vrcp.f32 %v2907_v4 }
 0x288   :  { %2260 = vpow2.f32 %v2020_v7  ;;  %v1175_v22 = vpop.f32.mrf.mxu1  ;;  %v1287_v7 = vmul.f32 %v2916_v19, %v1286_v35 }
 0x289   :  { %2262 = vrcp.f32 %v2914_v15 }
 0x28a   :  { %2264 = vrcp.f32 %v2921_v20  ;;  %v1288_v35 = vadd.f32 %v2916_v19, %v1287_v7  ;;  %v1308_v7 = vand.u32 2147483647, %v2914_v15 }
 0x28b   :  { %v2901_v47 = vpop.f32.mrf.mxu3  ;;  %2266 = vpow2.f32 %v2101_v24  ;;  %v1209_v24 = vadd.f32 %v2876_v9, %v1173_v43  ;;  %v1176_v43 = vadd.f32 %v1175_v22, %v1078_v37 }
 0x28c   :  { %v2257_v29 = vpop.eup %2256  ;;  %v1292_v46 = vsel %vm2999_vm4, %v2916_v19, %v1288_v35  ;;  %v758_v19 = vand.u32 2147483647, %v2921_v20  ;;  %v760_v35 = vand.u32 2147483648, %v2921_v20  ;;  %vm3041_vm10 = vcmp.eq.f32.partialorder %v1308_v7, 8.507059e+37 }
 0x28d   :  { %v2936_v34 = vpop.eup %2258  ;;  %v2943_v50 = vadd.f32 1.0, %v2257_v29  ;;  %v745_v29 = vand.u32 2147483648, %v2907_v4 }
 0x28e   :  { %v2261_v40 = vpop.eup %2260  ;;  %v735_v2 = vmul.f32 %v2936_v34, %v2907_v4  ;;  %vm740_vm6 = vweird.f32 %v2936_v34  ;;  %vm3074_vm12 = vcmp.eq.f32.partialorder %v758_v19, 8.507059e+37  ;;  %v3091_v19 = vpop.f32.mrf.mxu2 }
 0x28f   :  { %v2941_v49 = vpop.eup %2262  ;;  %v2960_v11 = vadd.f32 1.0, %v2261_v40  ;;  %v1325_v5 = vand.u32 2147483648, %v2943_v50  ;;  %vm3065_vm11 = vmor %vm739_vm3, %vm740_vm6  ;;  %vm1319_vm15 = vweird.f32 %v2943_v50 }
 0x290   :  { %1742 = vmatmul.bf16.gmra.mxu3 %v2666_v21  ;;  %v618_v21 = vadd.f32 %v2857_v63, %v2825_v30  ;;  %v2931_v30 = vld [vmem:[%s4091_s12] ss:$0 sm:$0xff]  ;;  %v1208_v63 = vadd.f32 %v2876_v9, %v1171_v25  ;;  %v2952_v61 = vpop.eup %2264  ;;  %v1310_v25 = vand.u32 2147483648, %v2914_v15  ;;  %v1177_v22 = vpop.f32.mrf.mxu1  ;;  %vm1305_vm7 = vweird.f32 %v2941_v49 }
 0x291   :  { %v2948_v55 = vadd.f32 %v2931_v30, %v2871_v10  ;;  %v2958_v26 = vadd.f32 %v2931_v30, %v2887_v23  ;;  %v2267_v10 = vpop.eup %2266  ;;  %v750_v40 = vmul.f32 %v2952_v61, %v2921_v20  ;;  %vm3086_vm13 = vmor %vm1304_vm5, %vm1305_vm7  ;;  %vm755_vm14 = vweird.f32 %v2952_v61 }
 0x292   :  { %v657_v28 = vadd.f32 %v2885_v13, %v618_v21  ;;  %v2102_v56 = vmul.f32 -1.442695, %v1208_v63  ;;  %v1300_v21 = vmul.f32 %v2941_v49, %v2914_v15  ;;  %v2979_v63 = vadd.f32 1.0, %v2267_v10  ;;  %vm3124_vm1 = vmor %vm754_vm9, %vm755_vm14 }
 0x293   :  { %v2912_v14 = vpop.f32.mrf.mxu3  ;;  %v751_v1 = vsub.f32 1.0, %v750_v40 }
 0x294   :  { %v2021_v17 = vmul.f32 -1.442695, %v657_v28  ;;  %v736_v28 = vsub.f32 1.0, %v735_v2  ;;  %v1301_v42 = vsub.f32 1.0, %v1300_v21  ;;  %v743_v2 = vand.u32 2147483647, %v2907_v4 }
 0x295   :  { %vm1334_vm9 = vweird.f32 %v2979_v63 }
 0x296   :  { %2268 = vpow2.f32 %v2021_v17  ;;  %v2103_v17 = vmul.f32 -1.442695, %v1209_v24  ;;  %v737_v21 = vmul.f32 %v2936_v34, %v736_v28  ;;  %v3007_v24 = vor.u32 1.1754944e-38, %v745_v29 }
 0x297   :  { %2270 = vrcp.f32 %v2943_v50  ;;  %v623_v28 = vadd.f32 %v2866_v8, %v2833_v38  ;;  %v1210_v29 = vadd.f32 %v2876_v9, %v1176_v43  ;;  %vm3025_vm8 = vcmp.eq.f32.partialorder %v743_v2, 8.507059e+37 }
 0x298   :  { %2272 = vpow2.f32 %v2102_v56  ;;  %v1080_v56 = vpop.f32.mrf.mxu0  ;;  %v3045_v2 = vor.u32 1.1754944e-38, %v1325_v5  ;;  %v1180_v15 = vpop.f32.mrf.mxu1 }
 0x299   :  { %2274 = vrcp.f32 %v2960_v11 }
 0x29a   :  { %2276 = vrcp.f32 %v2979_v63 }
 0x29b   :  { %v2934_v18 = vpop.f32.mrf.mxu3  ;;  %2278 = vpow2.f32 %v2103_v17  ;;  %v3039_v17 = vsel %vm2969_vm2, %v1296_v12, %v1292_v46  ;;  %v761_v46 = vor.u32 1.1754944e-38, %v760_v35  ;;  %v1178_v35 = vadd.f32 %v1177_v22, %v1080_v56 }
 0x29c   :  { %4099 = vst [vmem:[#allocation7_spill] sm:$0xff] %v2934_v18  ;;  %v2269_v10 = vpop.eup %2268  ;;  %v3072_v5 = vmul.f32 %v3039_v17, %v2597_v57  ;;  %vm769_vm2 = vweird.f32 %v2960_v11 }
 0x29d   :  { %v3023_v59 = vadd.f32 1.0, %v2269_v10  ;;  %v3049_v10 = vadd.f32 %v2931_v30, %v2909_v6 }
 0x29f   :  { %2280 = vrcp.f32 %v3023_v59 }
 0x2a0   :  { %1747 = vmatmul.bf16.gmra.mxu3 %v2699_v32  ;;  %v621_v32 = vadd.f32 %v2862_v60, %v2827_v33  ;;  %v2985_v33 = vor.u32 1.1754944e-38, %v1310_v25  ;;  %v2989_v60 = vadd.f32 %v2931_v30, %v2896_v39  ;;  %v3009_v25 = vpop.eup %2270 }
 0x2a1   :  { %v2273_v62 = vpop.eup %2272  ;;  %v1315_v38 = vmul.f32 %v3009_v25, %v2943_v50  ;;  %vm1320_vm0 = vweird.f32 %v3009_v25 }
 0x2a2   :  { %v658_v39 = vadd.f32 %v2885_v13, %v621_v32  ;;  %v1302_v32 = vmul.f32 %v2941_v49, %v1301_v42  ;;  %v738_v42 = vadd.f32 %v2936_v34, %v737_v21  ;;  %v3051_v37 = vadd.f32 1.0, %v2273_v62  ;;  %vm3173_vm4 = vmor %vm1319_vm15, %vm1320_vm0 }
 0x2a3   :  { %v2975_v27 = vpop.f32.mrf.mxu3  ;;  %v659_v21 = vadd.f32 %v2885_v13, %v623_v28  ;;  %v1316_v28 = vsub.f32 1.0, %v1315_v38  ;;  %v1083_v38 = vpop.f32.mrf.mxu0 }
 0x2a4   :  { %4102 = vst [vmem:[#allocation8_spill] sm:$0xff] %v2975_v27  ;;  %v3020_v27 = vpop.eup %2274  ;;  %v2022_v8 = vmul.f32 -1.442695, %v658_v39  ;;  %v752_v39 = vmul.f32 %v2952_v61, %v751_v1  ;;  %v1303_v12 = vadd.f32 %v2941_v49, %v1302_v32  ;;  %v742_v4 = vsel %vm3065_vm11, %v2936_v34, %v738_v42 }
 0x2a5   :  { %v765_v23 = vmul.f32 %v3020_v27, %v2960_v11  ;;  %v3058_v7 = vpop.eup %2276  ;;  %v2023_v34 = vmul.f32 -1.442695, %v659_v21  ;;  %vm770_vm3 = vweird.f32 %v3020_v27 }
 0x2a6   :  { %v2279_v32 = vpop.eup %2278  ;;  %2282 = vpow2.f32 %v2022_v8  ;;  %v753_v8 = vadd.f32 %v2952_v61, %v752_v39  ;;  %v1307_v42 = vsel %vm3086_vm13, %v2941_v49, %v1303_v12  ;;  %v1330_v56 = vmul.f32 %v3058_v7, %v2979_v63  ;;  %v1618_v12 = vpop.f32.mrf.mxu2  ;;  %vm3205_vm7 = vmor %vm769_vm2, %vm770_vm3 }
 0x2a7   :  { %2284 = vrcp.f32 %v3051_v37  ;;  %v766_v62 = vsub.f32 1.0, %v765_v23  ;;  %v3104_v22 = vadd.f32 1.0, %v2279_v32  ;;  %v1317_v39 = vmul.f32 %v3009_v25, %v1316_v28  ;;  %v3128_v23 = vpop.eup %2280 }
 0x2a8   :  { %v3118_v49 = vsel %vm3025_vm8, %v3007_v24, %v742_v4  ;;  %v1211_v32 = vadd.f32 %v2876_v9, %v1178_v35  ;;  %v757_v18 = vsel %vm3124_vm1, %v2952_v61, %v753_v8  ;;  %v3139_v24 = vsel %vm3041_vm10, %v2985_v33, %v1307_v42 }
 0x2a9   :  { %v767_v28 = vmul.f32 %v3020_v27, %v766_v62  ;;  %v3151_v61 = vadd.f32 %v2931_v30, %v2991_v52  ;;  %v3155_v43 = vsel %vm3074_vm12, %v761_v46, %v757_v18  ;;  %v1318_v35 = vadd.f32 %v3009_v25, %v1317_v39 }
 0x2aa   :  { %v780_v8 = vmul.f32 %v3128_v23, %v3023_v59  ;;  %v2105_v62 = vmul.f32 -1.442695, %v1211_v32  ;;  %v1323_v46 = vand.u32 2147483647, %v2943_v50  ;;  %v3184_v32 = vmul.f32 %v3139_v24, %v2602_v58 }
 0x2ab   :  { %v3034_v40 = vpop.f32.mrf.mxu3  ;;  %v768_v6 = vadd.f32 %v3020_v27, %v767_v28  ;;  %vm1335_vm6 = vweird.f32 %v3058_v7  ;;  %v1370_v58 = vand.u32 2147483648, %v3104_v22  ;;  %vm784_vm10 = vweird.f32 %v3023_v59 }
 0x2ac   :  { %4107 = vst [vmem:[#allocation9_spill] sm:$0xff] %v3034_v40  ;;  %v2104_v40 = vmul.f32 -1.442695, %v1210_v29  ;;  %v1340_v29 = vand.u32 2147483648, %v2979_v63  ;;  %v2283_v20 = vpop.eup %2282  ;;  %vm1324_vm8 = vcmp.eq.f32.partialorder %v1323_v46, 8.507059e+37  ;;  %v631_v28 = vadd.f32 %v2893_v31, %v2843_v48  ;;  %vm3277_vm12 = vmor %vm1334_vm9, %vm1335_vm6 }
 0x2ad   :  { %vm785_vm11 = vweird.f32 %v3128_v23  ;;  %v788_v48 = vand.u32 2147483647, %v3023_v59  ;;  %vm1349_vm2 = vweird.f32 %v3051_v37 }
 0x2ae   :  { %2286 = vpow2.f32 %v2104_v40  ;;  %v3107_v1 = vor.u32 1.1754944e-38, %v1340_v29  ;;  %v3111_v40 = vadd.f32 %v2931_v30, %v2938_v36  ;;  %v626_v36 = vadd.f32 %v2869_v3, %v2835_v41  ;;  %v3144_v41 = vpop.eup %2284  ;;  %vm3295_vm13 = vmor %vm784_vm10, %vm785_vm11 }
 0x2af   :  { %2288 = vpow2.f32 %v2023_v34  ;;  %v773_v29 = vand.u32 2147483647, %v2960_v11  ;;  %v1331_v3 = vsub.f32 1.0, %v1330_v56  ;;  %v3161_v34 = vadd.f32 1.0, %v2283_v20  ;;  %v1182_v20 = vpop.f32.mrf.mxu1 }
 0x2b0   :  { %1752 = vmatmul.bf16.gmra.mxu3 %v2738_v45  ;;  %v1355_v45 = vand.u32 2147483648, %v3051_v37  ;;  %2290 = vrcp.f32 %v3104_v22  ;;  %v660_v42 = vadd.f32 %v2885_v13, %v626_v36  ;;  %v1181_v56 = vadd.f32 %v1180_v15, %v1083_v38  ;;  %v1085_v36 = vpop.f32.mrf.mxu0 }
 0x2b1   :  { %v1345_v52 = vmul.f32 %v3144_v41, %v3051_v37  ;;  %v1332_v39 = vmul.f32 %v3058_v7, %v1331_v3  ;;  %v628_v15 = vadd.f32 %v2879_v16, %v2841_v44  ;;  %vm3188_vm5 = vcmp.eq.f32.partialorder %v773_v29, 8.507059e+37 }
 0x2b2   :  { %v3146_v4 = vor.u32 1.1754944e-38, %v1355_v45  ;;  %v775_v3 = vand.u32 2147483648, %v2960_v11  ;;  %v1322_v44 = vsel %vm3173_vm4, %v3009_v25, %v1318_v35  ;;  %v781_v16 = vsub.f32 1.0, %v780_v8 }
 0x2b3   :  { %v3113_v21 = vpop.f32.mrf.mxu3  ;;  %v2024_v57 = vmul.f32 -1.442695, %v660_v42  ;;  %2292 = vpow2.f32 %v2105_v62  ;;  %v1212_v29 = vadd.f32 %v2876_v9, %v1181_v56  ;;  %v1346_v25 = vsub.f32 1.0, %v1345_v52 }
 0x2b4   :  { %4116 = vst [vmem:[#allocation10_spill] sm:$0xff] %v3113_v21  ;;  %v2287_v33 = vpop.eup %2286  ;;  %2294 = vrcp.f32 %v3161_v34  ;;  %v772_v35 = vsel %vm3205_vm7, %v3020_v27, %v768_v6  ;;  %v661_v11 = vadd.f32 %v2885_v13, %v628_v15  ;;  %v3219_v42 = vsel %vm1324_vm8, %v3045_v2, %v1322_v44  ;;  %v3233_v2 = vld [vmem:[%s4093_s13] ss:$0 sm:$0xff] }
 0x2b5   :  { %v3178_v38 = vadd.f32 1.0, %v2287_v33  ;;  %v2289_v18 = vpop.eup %2288  ;;  %v3225_v56 = vadd.f32 %v2931_v30, %v3091_v19  ;;  %v776_v27 = vor.u32 1.1754944e-38, %v775_v3  ;;  %v782_v52 = vmul.f32 %v3128_v23, %v781_v16 }
 0x2b6   :  { %v3196_v33 = vpop.eup %2290  ;;  %v3214_v8 = vadd.f32 1.0, %v2289_v18  ;;  %v3228_v6 = vor.u32 1.1754944e-38, %v1370_v58  ;;  %v2106_v46 = vmul.f32 -1.442695, %v1212_v29  ;;  %v1183_v45 = vadd.f32 %v1182_v20, %v1085_v36 }
 0x2b7   :  { %2296 = vrcp.f32 %v3178_v38  ;;  %v1360_v62 = vmul.f32 %v3196_v33, %v3104_v22  ;;  %4126 = vst [vmem:[#allocation12_spill] sm:$0xff] %v3225_v56  ;;  %v3236_v15 = vmul.f32 %v3144_v41, %v1346_v25  ;;  %v1385_v18 = vand.u32 2147483648, %v3178_v38 }
 0x2b8   :  { %2298 = vpow2.f32 %v2024_v57  ;;  %v3241_v19 = vsel %vm3188_vm5, %v776_v27, %v772_v35  ;;  %v2025_v57 = vmul.f32 -1.442695, %v661_v11  ;;  %v3247_v36 = vmul.f32 %v3219_v42, %v2612_v0  ;;  %v1088_v35 = vpop.f32.mrf.mxu0 }
 0x2b9   :  { %v2293_v3 = vpop.eup %2292  ;;  %2300 = vrcp.f32 %v3214_v8  ;;  %v1361_v44 = vsub.f32 1.0, %v1360_v62  ;;  %v3253_v16 = vadd.f32 %v2931_v30, %v1618_v12  ;;  %v783_v29 = vadd.f32 %v3128_v23, %v782_v52 }
 0x2ba   :  { %v3250_v20 = vpop.eup %2294  ;;  %2302 = vpow2.f32 %v2106_v46  ;;  %v1213_v0 = vadd.f32 %v2876_v9, %v1183_v45  ;;  %v1333_v27 = vadd.f32 %v3058_v7, %v1332_v39  ;;  %v3263_v62 = vor.u32 1.1754944e-38, %v1385_v18 }
 0x2bb   :  { %v3186_v50 = vpop.f32.mrf.mxu3  ;;  %4127 = vst [vmem:[#allocation13_spill] sm:$0xff] %v3253_v16  ;;  %v3265_v12 = vadd.f32 1.0, %v2293_v3  ;;  %v1185_v16 = vpop.f32.mrf.mxu1  ;;  %2304 = vpow2.f32 %v2025_v57  ;;  %v1338_v46 = vand.u32 2147483647, %v2979_v63  ;;  %v795_v45 = vmul.f32 %v3250_v20, %v3161_v34 }
 0x2bc   :  { %4121 = vst [vmem:[#allocation11_spill] sm:$0xff] %v3186_v50  ;;  %v1621_v50 = vpop.f32.mrf.mxu2  ;;  %v3282_v18 = vmul.f32 %v3196_v33, %v1361_v44  ;;  %v790_v57 = vand.u32 2147483648, %v3023_v59  ;;  %v1186_v21 = vadd.f32 %v1185_v16, %v1088_v35  ;;  %vm3308_vm14 = vcmp.eq.f32.partialorder %v788_v48, 8.507059e+37 }
 0x2bd   :  { %v3258_v25 = vpop.eup %2296  ;;  %4128 = vst [vmem:[#allocation14_spill] sm:$0xff] %v3263_v62  ;;  %2306 = vrcp.f32 %v3265_v12  ;;  %vm1339_vm15 = vcmp.eq.f32.partialorder %v1338_v46, 8.507059e+37  ;;  %v796_v35 = vsub.f32 1.0, %v795_v45  ;;  %vm1350_vm0 = vweird.f32 %v3144_v41 }
 0x2be   :  { %v2299_v31 = vpop.eup %2298  ;;  %v1375_v3 = vmul.f32 %v3258_v25, %v3178_v38  ;;  %v3325_v45 = vadd.f32 %v2931_v30, %v1621_v50  ;;  %vm799_vm1 = vweird.f32 %v3161_v34  ;;  %vm800_vm3 = vweird.f32 %v3250_v20  ;;  %vm3408_vm6 = vmor %vm1349_vm2, %vm1350_vm0 }
 0x2bf   :  { %v3302_v62 = vadd.f32 1.0, %v2299_v31  ;;  %v791_v31 = vor.u32 1.1754944e-38, %v790_v57  ;;  %vm3384_vm4 = vmor %vm799_vm1, %vm800_vm3  ;;  %vm1365_vm7 = vweird.f32 %v3196_v33  ;;  %vm1364_vm8 = vweird.f32 %v3104_v22 }
 0x2c0   :  { %v1090_v16 = vpop.f32.mrf.mxu0  ;;  %vm814_vm10 = vweird.f32 %v3214_v8  ;;  %vm1380_vm0 = vweird.f32 %v3258_v25  ;;  %vm1379_vm2 = vweird.f32 %v3178_v38 }
 0x2c1   :  { %vm829_vm1 = vweird.f32 %v3302_v62 }
 0x2c3   :  { %v1718_v58 = vpop.f32.mrf.mxu3 }
 0x2c4   :  { %v1719_v11 = vadd.f32 %v3233_v2, %v1718_v58  ;;  %v3288_v58 = vpop.eup %2300  ;;  %v1623_v57 = vpop.f32.mrf.mxu2 }
 0x2c5   :  { %v2303_v59 = vpop.eup %2302  ;;  %vm815_vm11 = vweird.f32 %v3288_v58 }
 0x2c6   :  { %v1758_v52 = vmul.f32 %v1719_v11, %v3118_v49  ;;  %v662_v49 = vadd.f32 %v2885_v13, %v631_v28  ;;  %v2107_v11 = vmul.f32 -1.442695, %v1213_v0  ;;  %v1337_v28 = vsel %vm3277_vm12, %v3058_v7, %v1333_v27  ;;  %v2305_v56 = vpop.eup %2304  ;;  %vm3490_vm12 = vmor %vm814_vm10, %vm815_vm11 }
 0x2c7   :  { %v1400_v0 = vand.u32 2147483648, %v3265_v12  ;;  %v3314_v39 = vsel %vm1339_vm15, %v3107_v1, %v1337_v28  ;;  %v3322_v46 = vadd.f32 1.0, %v2303_v59  ;;  %v3342_v50 = vadd.f32 1.0, %v2305_v56  ;;  %v1187_v59 = vpop.f32.mrf.mxu1 }
 0x2c8   :  { %v1774_v63 = vadd.f32 %v1758_v52, %v2948_v55  ;;  %v787_v55 = vsel %vm3295_vm13, %v3128_v23, %v783_v29  ;;  %v1376_v52 = vsub.f32 1.0, %v1375_v3  ;;  %v2026_v7 = vmul.f32 -1.442695, %v662_v49  ;;  %vm3499_vm13 = vmor %vm1364_vm8, %vm1365_vm7 }
 0x2c9   :  { %v633_v23 = vadd.f32 %v2901_v47, %v2845_v51  ;;  %v1214_v29 = vadd.f32 %v2876_v9, %v1186_v21  ;;  %v3329_v1 = vsel %vm3308_vm14, %v791_v31, %v787_v55  ;;  %v3331_v3 = vor.u32 1.1754944e-38, %v1400_v0  ;;  %v3336_v21 = vpop.eup %2306 }
 0x2ca   :  { %2308 = vtanh.f32 %v1774_v63  ;;  %v797_v47 = vmul.f32 %v3250_v20, %v796_v35  ;;  %v3340_v49 = vmul.f32 %v3258_v25, %v1376_v52  ;;  %v4135_v0 = vsub.f32 1.0, %v3039_v17 }
 0x2cb   :  { %v1720_v27 = vpop.f32.mrf.mxu3  ;;  %2310 = vpow2.f32 %v2107_v11  ;;  %v1809_v11 = vsub.f32 1.0, %v3314_v39  ;;  %v663_v28 = vadd.f32 %v2885_v13, %v633_v23  ;;  %v2108_v55 = vmul.f32 -1.442695, %v1214_v29 }
 0x2cc   :  { %v1721_v48 = vadd.f32 %v3233_v2, %v1720_v27  ;;  %2312 = vrcp.f32 %v3302_v62  ;;  %v803_v52 = vand.u32 2147483647, %v3161_v34  ;;  %v1415_v31 = vand.u32 2147483648, %v3322_v46 }
 0x2cd   :  { %2314 = vpow2.f32 %v2026_v7  ;;  %v1390_v7 = vmul.f32 %v3336_v21, %v3265_v12  ;;  %v798_v23 = vadd.f32 %v3250_v20, %v797_v47  ;;  %vm1395_vm7 = vweird.f32 %v3336_v21 }
 0x2ce   :  { %v1759_v51 = vmul.f32 %v1721_v48, %v3155_v43  ;;  %v2406_v43 = vld [vmem:[%s4083_s2 + $0x18] sm:$0xff]  ;;  %2316 = vrcp.f32 %v3322_v46  ;;  %vm3399_vm5 = vcmp.eq.f32.partialorder %v803_v52, 8.507059e+37  ;;  %vm844_vm8 = vweird.f32 %v3342_v50 }
 0x2cf   :  { %v3349_v63 = vmul.f32 %v2406_v43, %v3314_v39  ;;  %v810_v43 = vmul.f32 %v3288_v58, %v3214_v8  ;;  %vm1394_vm10 = vweird.f32 %v3265_v12 }
 0x2d0   :  { %v2309_v44 = vpop.eup %2308  ;;  %v1775_v56 = vadd.f32 %v1759_v51, %v2958_v26  ;;  %v1188_v26 = vadd.f32 %v1187_v59, %v1090_v16  ;;  %v805_v51 = vand.u32 2147483648, %v3161_v34  ;;  %v3375_v16 = vadd.f32 %v2931_v30, %v1623_v57 }
 0x2d1   :  { %v1822_v35 = vmul.f32 %v2309_v44, %v4135_v0  ;;  %v2311_v27 = vpop.eup %2310  ;;  %v2027_v44 = vmul.f32 -1.442695, %v663_v28  ;;  %v636_v0 = vadd.f32 %v2912_v14, %v2847_v53  ;;  %v1348_v53 = vadd.f32 %v3144_v41, %v3236_v15 }
 0x2d2   :  { %2318 = vtanh.f32 %v1775_v56  ;;  %v3362_v29 = vpop.eup %2312  ;;  %v3372_v47 = vadd.f32 1.0, %v2311_v27  ;;  %v1391_v28 = vsub.f32 1.0, %v1390_v7  ;;  %v802_v59 = vsel %vm3384_vm4, %v3250_v20, %v798_v23 }
 0x2d3   :  { %v1854_v48 = vadd.f32 %v3072_v5, %v1822_v35  ;;  %v1723_v17 = vpop.f32.mrf.mxu3  ;;  %2320 = vpow2.f32 %v2108_v55  ;;  %v2315_v14 = vpop.eup %2314  ;;  %v3390_v55 = vor.u32 1.1754944e-38, %v1415_v31  ;;  %v1215_v34 = vadd.f32 %v2876_v9, %v1188_v26 }
 0x2d4   :  { %v1724_v56 = vadd.f32 %v3233_v2, %v1723_v17  ;;  %2322 = vrcp.f32 %v3342_v50  ;;  %v3396_v35 = vpop.eup %2316  ;;  %v1353_v15 = vand.u32 2147483647, %v3051_v37  ;;  %v664_v20 = vadd.f32 %v2885_v13, %v636_v0  ;;  %v1626_v26 = vpop.f32.mrf.mxu2 }
 0x2d5   :  { %1870 = vst [vmem:[%s4094_s14] sm:$0xff] %v1854_v48  ;;  %v811_v48 = vsub.f32 1.0, %v810_v43  ;;  %2324 = vpow2.f32 %v2027_v44  ;;  %v806_v31 = vor.u32 1.1754944e-38, %v805_v51  ;;  %v3415_v23 = vadd.f32 1.0, %v2315_v14 }
 0x2d6   :  { %v1760_v57 = vmul.f32 %v1724_v56, %v3241_v19  ;;  %2326 = vrcp.f32 %v3372_v47  ;;  %v4142_v17 = vsub.f32 1.0, %v3139_v24  ;;  %v1352_v43 = vsel %vm3408_vm6, %v3144_v41, %v1348_v53  ;;  %vm3609_vm6 = vmor %vm1379_vm2, %vm1380_vm0 }
 0x2d7   :  { %v3424_v0 = vmul.f32 %v3336_v21, %v1391_v28  ;;  %v3430_v51 = vsel %vm3399_vm5, %v806_v31, %v802_v59  ;;  %v2109_v24 = vmul.f32 -1.442695, %v1215_v34  ;;  %vm1354_vm9 = vcmp.eq.f32.partialorder %v1353_v15, 8.507059e+37  ;;  %v4143_v28 = vld [vmem:[#allocation7_spill] sm:$0xff] }
 0x2d8   :  { %v2319_v7 = vpop.eup %2318  ;;  %v1776_v52 = vadd.f32 %v1760_v57, %v2989_v60  ;;  %v1405_v60 = vmul.f32 %v3396_v35, %v3322_v46  ;;  %v812_v53 = vmul.f32 %v3288_v58, %v811_v48  ;;  %v2028_v14 = vmul.f32 -1.442695, %v664_v20  ;;  %v1190_v48 = vpop.f32.mrf.mxu1 }
 0x2d9   :  { %v1823_v37 = vmul.f32 %v2319_v7, %v4142_v17  ;;  %v2321_v44 = vpop.eup %2320  ;;  %v638_v57 = vadd.f32 %v4143_v28, %v2850_v54  ;;  %v3441_v59 = vsel %vm1354_vm9, %v3146_v4, %v1352_v43  ;;  %v1430_v54 = vand.u32 2147483648, %v3372_v47  ;;  %v1093_v4 = vpop.f32.mrf.mxu0 }
 0x2da   :  { %2328 = vtanh.f32 %v1776_v52  ;;  %v3432_v56 = vpop.eup %2322  ;;  %v3444_v27 = vadd.f32 1.0, %v2321_v44  ;;  %v1406_v34 = vsub.f32 1.0, %v1405_v60  ;;  %v3453_v15 = vadd.f32 %v2931_v30, %v1626_v26 }
 0x2db   :  { %v1855_v5 = vadd.f32 %v3184_v32, %v1823_v37  ;;  %v1725_v41 = vpop.f32.mrf.mxu3  ;;  %2330 = vrcp.f32 %v3415_v23  ;;  %v2325_v32 = vpop.eup %2324  ;;  %v1810_v52 = vsub.f32 1.0, %v3441_v59  ;;  %v813_v31 = vadd.f32 %v3288_v58, %v812_v53 }
 0x2dc   :  { %v1726_v7 = vadd.f32 %v3233_v2, %v1725_v41  ;;  %v3456_v20 = vpop.eup %2326  ;;  %2332 = vpow2.f32 %v2109_v24  ;;  %v820_v17 = vand.u32 2147483648, %v3214_v8  ;;  %v665_v43 = vadd.f32 %v2885_v13, %v638_v57  ;;  %v1628_v28 = vpop.f32.mrf.mxu2 }
 0x2dd   :  { %1871 = vst [vmem:[%s4094_s14 + $0x8] sm:$0xff] %v1855_v5  ;;  %2334 = vpow2.f32 %v2028_v14  ;;  %v1363_v44 = vadd.f32 %v3196_v33, %v3282_v18  ;;  %v4144_v60 = vsub.f32 1.0, %v3219_v42  ;;  %v825_v5 = vmul.f32 %v3362_v29, %v3302_v62 }
 0x2de   :  { %v1761_v19 = vmul.f32 %v1726_v7, %v3329_v1  ;;  %2336 = vrcp.f32 %v3444_v27  ;;  %v1191_v1 = vadd.f32 %v1190_v48, %v1093_v4  ;;  %v3470_v41 = vor.u32 1.1754944e-38, %v1430_v54  ;;  %v2407_v7 = vld [vmem:[%s4083_s2 + $0x20] sm:$0xff] }
 0x2df   :  { %v3472_v53 = vadd.f32 1.0, %v2325_v32  ;;  %v818_v14 = vand.u32 2147483647, %v3214_v8  ;;  %v1420_v18 = vmul.f32 %v3456_v20, %v3372_v47  ;;  %v3484_v54 = vmul.f32 %v2407_v7, %v3441_v59 }
 0x2e0   :  { %v2329_v37 = vpop.eup %2328  ;;  %v1777_v26 = vadd.f32 %v1761_v19, %v3049_v10  ;;  %v1368_v4 = vand.u32 2147483647, %v3104_v22  ;;  %v3504_v48 = vmul.f32 %v3396_v35, %v1406_v34  ;;  %v2029_v19 = vmul.f32 -1.442695, %v665_v43 }
 0x2e1   :  { %v1824_v24 = vmul.f32 %v2329_v37, %v4144_v60  ;;  %v3475_v10 = vpop.eup %2330  ;;  %v817_v37 = vsel %vm3490_vm12, %v3288_v58, %v813_v31  ;;  %v1216_v60 = vadd.f32 %v2876_v9, %v1191_v1  ;;  %v821_v22 = vor.u32 1.1754944e-38, %v820_v17 }
 0x2e2   :  { %2338 = vtanh.f32 %v1777_v26  ;;  %v2333_v26 = vpop.eup %2332  ;;  %v1367_v34 = vsel %vm3499_vm13, %v3196_v33, %v1363_v44  ;;  %vm819_vm14 = vcmp.eq.f32.partialorder %v818_v14, 8.507059e+37  ;;  %v1421_v1 = vsub.f32 1.0, %v1420_v18  ;;  %v4150_v14 = vld [vmem:[#allocation8_spill] sm:$0xff] }
 0x2e3   :  { %v1856_v57 = vadd.f32 %v3247_v36, %v1824_v24  ;;  %v1728_v42 = vpop.f32.mrf.mxu3  ;;  %v826_v24 = vsub.f32 1.0, %v825_v5  ;;  %v2335_v43 = vpop.eup %2334  ;;  %2340 = vrcp.f32 %v3472_v53  ;;  %v3523_v7 = vadd.f32 %v2931_v30, %v1628_v28  ;;  %v4149_v5 = vld [vmem:[#allocation3_spill] sm:$0xff] }
 0x2e4   :  { %v1729_v8 = vadd.f32 %v3233_v2, %v1728_v42  ;;  %v1445_v42 = vand.u32 2147483648, %v3444_v27  ;;  %v3520_v31 = vpop.eup %2336  ;;  %v822_v17 = vsel %vm819_vm14, %v821_v22, %v817_v37  ;;  %vm1369_vm15 = vcmp.eq.f32.partialorder %v1368_v4, 8.507059e+37  ;;  %v1095_v36 = vpop.f32.mrf.mxu0 }
 0x2e5   :  { %1872 = vst [vmem:[%s4094_s14 + $0x10] sm:$0xff] %v1856_v57  ;;  %v3525_v32 = vadd.f32 1.0, %v2333_v26  ;;  %2342 = vpow2.f32 %v2029_v19  ;;  %v3529_v44 = vsel %vm1369_vm15, %v3228_v6, %v1367_v34  ;;  %v641_v18 = vadd.f32 %v4150_v14, %v4149_v5  ;;  %v1192_v28 = vpop.f32.mrf.mxu1 }
 0x2e6   :  { %v1762_v58 = vmul.f32 %v1729_v8, %v3430_v51  ;;  %v2110_v51 = vmul.f32 -1.442695, %v1216_v60  ;;  %v827_v8 = vmul.f32 %v3362_v29, %v826_v24  ;;  %v3537_v37 = vor.u32 1.1754944e-38, %v1445_v42 }
 0x2e7   :  { %v3544_v6 = vmul.f32 %v3456_v20, %v1421_v1  ;;  %v1435_v19 = vmul.f32 %v3520_v31, %v3444_v27  ;;  %v3548_v39 = vadd.f32 1.0, %v2335_v43  ;;  %v1460_v22 = vand.u32 2147483648, %v3525_v32  ;;  %v1631_v1 = vpop.f32.mrf.mxu2 }
 0x2e8   :  { %v2339_v57 = vpop.eup %2338  ;;  %v1778_v33 = vadd.f32 %v1762_v58, %v3111_v40  ;;  %v840_v40 = vmul.f32 %v3432_v56, %v3342_v50  ;;  %v1193_v34 = vadd.f32 %v1192_v28, %v1095_v36  ;;  %v1811_v42 = vsub.f32 1.0, %v3529_v44 }
 0x2e9   :  { %v1825_v4 = vmul.f32 %v2339_v57, %v1809_v11  ;;  %v3551_v60 = vpop.eup %2340  ;;  %v666_v58 = vadd.f32 %v2885_v13, %v641_v18  ;;  %vm830_vm3 = vweird.f32 %v3362_v29  ;;  %v1436_v14 = vsub.f32 1.0, %v1435_v19  ;;  %v2408_v13 = vld [vmem:[%s4083_s2 + $0x28] sm:$0xff] }
 0x2ea   :  { %2344 = vtanh.f32 %v1778_v33  ;;  %v835_v33 = vand.u32 2147483648, %v3302_v62  ;;  %v841_v5 = vsub.f32 1.0, %v840_v40  ;;  %v833_v18 = vand.u32 2147483647, %v3302_v62  ;;  %vm3583_vm4 = vmor %vm829_vm1, %vm830_vm3 }
 0x2eb   :  { %v1857_v11 = vadd.f32 %v3349_v63, %v1825_v4  ;;  %v1730_v26 = vpop.f32.mrf.mxu3  ;;  %2346 = vpow2.f32 %v2110_v51  ;;  %v828_v63 = vadd.f32 %v3362_v29, %v827_v8  ;;  %v2343_v43 = vpop.eup %2342  ;;  %v3569_v51 = vmul.f32 %v2408_v13, %v3529_v44  ;;  %vm3695_vm1 = vmor %vm1394_vm10, %vm1395_vm7 }
 0x2ec   :  { %v1731_v24 = vadd.f32 %v3233_v2, %v1730_v26  ;;  %2348 = vrcp.f32 %v3525_v32  ;;  %v3572_v28 = vor.u32 1.1754944e-38, %v1460_v22  ;;  %v1217_v4 = vadd.f32 %v2876_v9, %v1193_v34 }
 0x2ed   :  { %1873 = vst [vmem:[%s4094_s14 + $0x18] sm:$0xff] %v1857_v11  ;;  %2350 = vrcp.f32 %v3548_v39  ;;  %v2030_v19 = vmul.f32 -1.442695, %v666_v58  ;;  %v1378_v9 = vadd.f32 %v3258_v25, %v3340_v49  ;;  %v842_v26 = vmul.f32 %v3432_v56, %v841_v5  ;;  %v1195_v13 = vpop.f32.mrf.mxu1 }
 0x2ee   :  { %v1763_v57 = vmul.f32 %v1731_v24, %v822_v17  ;;  %v3575_v17 = vadd.f32 %v2931_v30, %v1631_v1  ;;  %v832_v30 = vsel %vm3583_vm4, %v3362_v29, %v828_v63  ;;  %v855_v62 = vmul.f32 %v3475_v10, %v3415_v23 }
 0x2ef   :  { %v3598_v34 = vmul.f32 %v3520_v31, %v1436_v14  ;;  %v3600_v59 = vadd.f32 1.0, %v2343_v43  ;;  %vm834_vm5 = vcmp.eq.f32.partialorder %v833_v18, 8.507059e+37  ;;  %v2111_v58 = vmul.f32 -1.442695, %v1217_v4 }
 0x2f0   :  { %v2345_v36 = vpop.eup %2344  ;;  %v1779_v8 = vadd.f32 %v1763_v57, %v3151_v61  ;;  %v836_v61 = vor.u32 1.1754944e-38, %v835_v33  ;;  %v1383_v63 = vand.u32 2147483647, %v3178_v38  ;;  %v4156_v33 = vld [vmem:[#allocation9_spill] sm:$0xff]  ;;  %v1382_v14 = vsel %vm3609_vm6, %v3258_v25, %v1378_v9  ;;  %v1098_v38 = vpop.f32.mrf.mxu0 }
 0x2f1   :  { %v1826_v11 = vmul.f32 %v2345_v36, %v1810_v52  ;;  %v2347_v22 = vpop.eup %2346  ;;  %v843_v36 = vadd.f32 %v3432_v56, %v842_v26  ;;  %vm845_vm9 = vweird.f32 %v3432_v56  ;;  %v856_v4 = vsub.f32 1.0, %v855_v62 }
 0x2f2   :  { %2352 = vtanh.f32 %v1779_v8  ;;  %v3603_v24 = vpop.eup %2348  ;;  %v837_v1 = vsel %vm834_vm5, %v836_v61, %v832_v30  ;;  %v3633_v40 = vadd.f32 1.0, %v2347_v22  ;;  %v850_v25 = vand.u32 2147483648, %v3342_v50  ;;  %v3641_v61 = vld [vmem:[%s4092_s10] ss:$0 sm:$0xff]  ;;  %vm3651_vm12 = vmor %vm844_vm8, %vm845_vm9 }
 0x2f3   :  { %v1858_v52 = vadd.f32 %v3484_v54, %v1826_v11  ;;  %v1733_v29 = vpop.f32.mrf.mxu3  ;;  %v3615_v57 = vpop.eup %2350  ;;  %2354 = vpow2.f32 %v2030_v19  ;;  %v4155_v54 = vld [vmem:[#allocation4_spill] sm:$0xff]  ;;  %v1450_v8 = vmul.f32 %v3603_v24, %v3525_v32  ;;  %vm1384_vm11 = vcmp.eq.f32.partialorder %v1383_v63, 8.507059e+37 }
 0x2f4   :  { %v1734_v43 = vadd.f32 %v3233_v2, %v1733_v29  ;;  %v643_v5 = vadd.f32 %v4156_v33, %v4155_v54  ;;  %2356 = vrcp.f32 %v3600_v59  ;;  %v4157_v11 = vld [vmem:[#allocation12_spill] sm:$0xff]  ;;  %v848_v9 = vand.u32 2147483647, %v3342_v50 }
 0x2f5   :  { %1874 = vst [vmem:[%s4094_s14 + $0x20] sm:$0xff] %v1858_v52  ;;  %2358 = vpow2.f32 %v2111_v58  ;;  %v1196_v62 = vadd.f32 %v1195_v13, %v1098_v38  ;;  %v4158_v52 = vld [vmem:[#allocation14_spill] sm:$0xff]  ;;  %v847_v58 = vsel %vm3651_vm12, %v3432_v56, %v843_v36  ;;  %v870_v44 = vmul.f32 %v3551_v60, %v3472_v53 }
 0x2f6   :  { %v1764_v18 = vmul.f32 %v1734_v43, %v837_v1  ;;  %v667_v26 = vadd.f32 %v3641_v61, %v643_v5  ;;  %v1387_v29 = vsel %vm1384_vm11, %v4158_v52, %v1382_v14  ;;  %v857_v1 = vmul.f32 %v3475_v10, %v856_v4  ;;  %v2410_v5 = vld [vmem:[%s4083_s2 + $0x30] sm:$0xff] }
 0x2f7   :  { %v1451_v63 = vsub.f32 1.0, %v1450_v8  ;;  %v851_v43 = vor.u32 1.1754944e-38, %v850_v25  ;;  %v1812_v33 = vsub.f32 1.0, %v1387_v29  ;;  %v1844_v14 = vmul.f32 %v2410_v5, %v1387_v29  ;;  %v4171_v29 = vld [vmem:[#allocation11_spill] sm:$0xff] }
 0x2f8   :  { %v2353_v19 = vpop.eup %2352  ;;  %v1780_v30 = vadd.f32 %v1764_v18, %v4157_v11  ;;  %vm849_vm13 = vcmp.eq.f32.partialorder %v848_v9, 8.507059e+37  ;;  %vm1410_vm14 = vweird.f32 %v3396_v35  ;;  %v2031_v13 = vmul.f32 -1.442695, %v667_v26  ;;  %v4161_v9 = vld [vmem:[#allocation5_spill] sm:$0xff]  ;;  %v4162_v26 = vld [vmem:[#allocation10_spill] sm:$0xff] }
 0x2f9   :  { %v1827_v22 = vmul.f32 %v2353_v19, %v1811_v42  ;;  %v2355_v42 = vpop.eup %2354  ;;  %v852_v36 = vsel %vm849_vm13, %v851_v43, %v847_v58  ;;  %v1393_v4 = vadd.f32 %v3336_v21, %v3424_v0  ;;  %v858_v19 = vadd.f32 %v3475_v10, %v857_v1  ;;  %v4165_v58 = vld [vmem:[#allocation13_spill] sm:$0xff] }
 0x2fa   :  { %2360 = vtanh.f32 %v1780_v30  ;;  %v3667_v38 = vpop.eup %2356  ;;  %vm860_vm15 = vweird.f32 %v3475_v10  ;;  %v871_v11 = vsub.f32 1.0, %v870_v44  ;;  %vm1409_vm0 = vweird.f32 %v3322_v46 }
 0x2fb   :  { %2362 = vrcp.f32 %v3633_v40  ;;  %v1859_v50 = vadd.f32 %v3569_v51, %v1827_v22  ;;  %v1735_v54 = vpop.f32.mrf.mxu3  ;;  %v3673_v51 = vld [vmem:[%s4090_s11] ss:$0 sm:$0xff]  ;;  %v2359_v8 = vpop.eup %2358  ;;  %v3685_v30 = vmul.f32 %v3603_v24, %v1451_v63  ;;  %v1398_v22 = vand.u32 2147483647, %v3265_v12  ;;  %vm3746_vm9 = vmor %vm1409_vm0, %vm1410_vm14 }
 0x2fc   :  { %v1736_v56 = vadd.f32 %v3233_v2, %v1735_v54  ;;  %v1218_v18 = vadd.f32 %v3673_v51, %v1196_v62  ;;  %v646_v62 = vadd.f32 %v4162_v26, %v4161_v9  ;;  %v865_v52 = vand.u32 2147483648, %v3415_v23 }
 0x2fd   :  { %1875 = vst [vmem:[%s4094_s14 + $0x28] sm:$0xff] %v1859_v50  ;;  %v3699_v49 = vadd.f32 1.0, %v2355_v42  ;;  %vm859_vm2 = vweird.f32 %v3415_v23  ;;  %v863_v44 = vand.u32 2147483647, %v3415_v23  ;;  %2364 = vpow2.f32 %v2031_v13 }
 0x2fe   :  { %v1765_v25 = vmul.f32 %v1736_v56, %v852_v36  ;;  %v2112_v50 = vmul.f32 -1.442695, %v1218_v18  ;;  %v1397_v12 = vsel %vm3695_vm1, %v3336_v21, %v1393_v4  ;;  %vm3711_vm3 = vmor %vm859_vm2, %vm860_vm15  ;;  %v872_v54 = vmul.f32 %v3551_v60, %v871_v11 }
 0x2ff   :  { %v862_v23 = vsel %vm3711_vm3, %v3475_v10, %v858_v19  ;;  %v668_v5 = vadd.f32 %v3641_v61, %v646_v62  ;;  %vm1399_vm4 = vcmp.eq.f32.partialorder %v1398_v22, 8.507059e+37  ;;  %v866_v21 = vor.u32 1.1754944e-38, %v865_v52 }
 0x300   :  { %v2361_v0 = vpop.eup %2360  ;;  %v1781_v1 = vadd.f32 %v1765_v25, %v4165_v58  ;;  %v1402_v18 = vsel %vm1399_vm4, %v3331_v3, %v1397_v12  ;;  %vm864_vm5 = vcmp.eq.f32.partialorder %v863_v44, 8.507059e+37  ;;  %vm1425_vm6 = vweird.f32 %v3456_v20  ;;  %v2412_v12 = vld [vmem:[%s4083_s2 + $0x38] sm:$0xff] }
 0x301   :  { %v3704_v63 = vpop.eup %2362  ;;  %v1828_v43 = vmul.f32 %v2361_v0, %v1812_v33  ;;  %v885_v33 = vmul.f32 %v3615_v57, %v3548_v39  ;;  %v3730_v4 = vadd.f32 1.0, %v2359_v8  ;;  %v1408_v25 = vadd.f32 %v3396_v35, %v3504_v48  ;;  %v4170_v0 = vld [vmem:[#allocation6_spill] sm:$0xff] }
 0x302   :  { %2366 = vtanh.f32 %v1781_v1  ;;  %v3728_v10 = vmul.f32 %v3704_v63, %v3633_v40  ;;  %v873_v19 = vadd.f32 %v3551_v60, %v872_v54  ;;  %vm875_vm7 = vweird.f32 %v3551_v60 }
 0x303   :  { %v1860_v56 = vadd.f32 %v1844_v14, %v1828_v43  ;;  %v1738_v13 = vpop.f32.mrf.mxu3  ;;  %2368 = vrcp.f32 %v3699_v49  ;;  %v867_v14 = vsel %vm864_vm5, %v866_v21, %v862_v23  ;;  %v886_v11 = vsub.f32 1.0, %v885_v33  ;;  %v2365_v9 = vpop.eup %2364 }
 0x304   :  { %v1739_v36 = vadd.f32 %v3233_v2, %v1738_v13  ;;  %vm1424_vm8 = vweird.f32 %v3372_v47  ;;  %v2032_v26 = vmul.f32 -1.442695, %v668_v5  ;;  %v1813_v8 = vsub.f32 1.0, %v1402_v18  ;;  %v1197_v21 = vpop.f32.mrf.mxu1 }
 0x305   :  { %1876 = vst [vmem:[%s4094_s14 + $0x30] sm:$0xff] %v1860_v56  ;;  %v1413_v62 = vand.u32 2147483647, %v3322_v46  ;;  %v880_v22 = vand.u32 2147483648, %v3472_v53  ;;  %v648_v58 = vadd.f32 %v4171_v29, %v4170_v0  ;;  %vm874_vm10 = vweird.f32 %v3472_v53  ;;  %v1100_v56 = vpop.f32.mrf.mxu0  ;;  %vm3796_vm1 = vmor %vm1424_vm8, %vm1425_vm6 }
 0x306   :  { %v1766_v3 = vmul.f32 %v1739_v36, %v867_v14  ;;  %v878_v44 = vand.u32 2147483647, %v3472_v53  ;;  %2370 = vpow2.f32 %v2112_v50  ;;  %v1845_v46 = vmul.f32 %v2412_v12, %v1402_v18  ;;  %vm3763_vm11 = vmor %vm874_vm10, %vm875_vm7 }
 0x307   :  { %v1412_v42 = vsel %vm3746_vm9, %v3396_v35, %v1408_v25  ;;  %v877_v53 = vsel %vm3763_vm11, %v3551_v60, %v873_v19  ;;  %v887_v50 = vmul.f32 %v3615_v57, %v886_v11  ;;  %v900_v54 = vmul.f32 %v3667_v38, %v3600_v59 }
 0x308   :  { %v2367_v52 = vpop.eup %2366  ;;  %v1782_v1 = vadd.f32 %v1766_v3, %v3325_v45  ;;  %vm1414_vm12 = vcmp.eq.f32.partialorder %v1413_v62, 8.507059e+37  ;;  %v881_v33 = vor.u32 1.1754944e-38, %v880_v22  ;;  %v669_v13 = vadd.f32 %v3641_v61, %v648_v58  ;;  %v2413_v58 = vld [vmem:[%s4083_s2 + $0x40] sm:$0xff] }
 0x309   :  { %v1829_v43 = vmul.f32 %v2367_v52, %v1813_v8  ;;  %v3767_v45 = vpop.eup %2368  ;;  %v1417_v18 = vsel %vm1414_vm12, %v3390_v55, %v1412_v42  ;;  %vm879_vm13 = vcmp.eq.f32.partialorder %v878_v44, 8.507059e+37  ;;  %vm1440_vm14 = vweird.f32 %v3520_v31 }
 0x30a   :  { %2372 = vtanh.f32 %v1782_v1  ;;  %v3780_v60 = vadd.f32 1.0, %v2365_v9  ;;  %v882_v14 = vsel %vm879_vm13, %v881_v33, %v877_v53  ;;  %v1423_v25 = vadd.f32 %v3456_v20, %v3544_v6 }
 0x30b   :  { %2374 = vpow2.f32 %v2032_v26  ;;  %v1861_v35 = vadd.f32 %v1845_v46, %v1829_v43  ;;  %v1740_v5 = vpop.f32.mrf.mxu3  ;;  %v888_v55 = vadd.f32 %v3615_v57, %v887_v50  ;;  %vm890_vm15 = vweird.f32 %v3615_v57 }
 0x30c   :  { %v1741_v36 = vadd.f32 %v3233_v2, %v1740_v5  ;;  %2376 = vrcp.f32 %v3730_v4  ;;  %v901_v3 = vsub.f32 1.0, %v900_v54  ;;  %v2371_v19 = vpop.eup %2370  ;;  %vm1439_vm0 = vweird.f32 %v3444_v27 }
 0x30d   :  { %1877 = vst [vmem:[%s4094_s14 + $0x38] sm:$0xff] %v1861_v35  ;;  %v1198_v11 = vadd.f32 %v1197_v21, %v1100_v56  ;;  %v1814_v9 = vsub.f32 1.0, %v1417_v18  ;;  %v1428_v26 = vand.u32 2147483647, %v3372_v47  ;;  %v895_v8 = vand.u32 2147483648, %v3548_v39  ;;  %vm3847_vm9 = vmor %vm1439_vm0, %vm1440_vm14 }
 0x30e   :  { %v1767_v61 = vmul.f32 %v1741_v36, %v882_v14  ;;  %v2033_v22 = vmul.f32 -1.442695, %v669_v13  ;;  %vm889_vm2 = vweird.f32 %v3548_v39  ;;  %v893_v48 = vand.u32 2147483647, %v3548_v39 }
 0x30f   :  { %2378 = vrcp.f32 %v3780_v60  ;;  %v1846_v47 = vmul.f32 %v2413_v58, %v1417_v18  ;;  %v1427_v1 = vsel %vm3796_vm1, %v3456_v20, %v1423_v25  ;;  %vm3812_vm3 = vmor %vm889_vm2, %vm890_vm15  ;;  %v902_v44 = vmul.f32 %v3667_v38, %v901_v3  ;;  %v2414_v3 = vld [vmem:[%s4083_s2 + $0x48] sm:$0xff] }
 0x310   :  { %v2373_v62 = vpop.eup %2372  ;;  %v1783_v52 = vadd.f32 %v1767_v61, %v3375_v16  ;;  %v892_v39 = vsel %vm3812_vm3, %v3615_v57, %v888_v55  ;;  %v915_v43 = vmul.f32 %v3767_v45, %v3699_v49  ;;  %v1219_v20 = vadd.f32 %v3673_v51, %v1198_v11 }
 0x311   :  { %v2375_v0 = vpop.eup %2374  ;;  %v1830_v29 = vmul.f32 %v2373_v62, %v1814_v9  ;;  %vm1429_vm4 = vcmp.eq.f32.partialorder %v1428_v26, 8.507059e+37  ;;  %v896_v42 = vor.u32 1.1754944e-38, %v895_v8  ;;  %vm894_vm5 = vcmp.eq.f32.partialorder %v893_v48, 8.507059e+37 }
 0x312   :  { %2380 = vtanh.f32 %v1783_v52  ;;  %v3822_v12 = vpop.eup %2376  ;;  %v1432_v53 = vsel %vm1429_vm4, %v3470_v41, %v1427_v1  ;;  %vm1455_vm6 = vweird.f32 %v3603_v24  ;;  %v1466_v57 = vsub.f32 1.0, %v3728_v10 }
 0x313   :  { %v1862_v46 = vadd.f32 %v1846_v47, %v1830_v29  ;;  %v1743_v23 = vpop.f32.mrf.mxu3  ;;  %2382 = vpow2.f32 %v2033_v22  ;;  %v3829_v54 = vadd.f32 1.0, %v2375_v0  ;;  %v897_v51 = vsel %vm894_vm5, %v896_v42, %v892_v39 }
 0x314   :  { %v1744_v50 = vadd.f32 %v3233_v2, %v1743_v23  ;;  %v1438_v35 = vadd.f32 %v3520_v31, %v3598_v34  ;;  %v903_v41 = vadd.f32 %v3667_v38, %v902_v44  ;;  %vm905_vm7 = vweird.f32 %v3667_v38 }
 0x315   :  { %1878 = vst [vmem:[%s4094_s14 + $0x40] sm:$0xff] %v1862_v46  ;;  %v916_v5 = vsub.f32 1.0, %v915_v43  ;;  %v3838_v56 = vpop.eup %2378  ;;  %vm1454_vm8 = vweird.f32 %v3525_v32  ;;  %v2113_v10 = vmul.f32 -1.442695, %v1219_v20  ;;  %v1815_v21 = vsub.f32 1.0, %v1432_v53 }
 0x316   :  { %v1768_v33 = vmul.f32 %v1744_v50, %v897_v51  ;;  %v1443_v13 = vand.u32 2147483647, %v3444_v27  ;;  %v910_v18 = vand.u32 2147483648, %v3600_v59  ;;  %v3851_v14 = vadd.f32 1.0, %v2371_v19  ;;  %vm3898_vm0 = vmor %vm1454_vm8, %vm1455_vm6 }
 0x317   :  { %vm904_vm10 = vweird.f32 %v3600_v59  ;;  %v908_v61 = vand.u32 2147483647, %v3600_v59  ;;  %2384 = vrcp.f32 %v3829_v54  ;;  %v1847_v27 = vmul.f32 %v2414_v3, %v1432_v53  ;;  %v1633_v3 = vpop.f32.mrf.mxu2 }
 0x318   :  { %v2381_v36 = vpop.eup %2380  ;;  %v1784_v25 = vadd.f32 %v1768_v33, %v3453_v15  ;;  %v1442_v11 = vsel %vm3847_vm9, %v3520_v31, %v1438_v35  ;;  %vm3865_vm11 = vmor %vm904_vm10, %vm905_vm7  ;;  %v917_v9 = vmul.f32 %v3767_v45, %v916_v5  ;;  %v930_v26 = vmul.f32 %v3838_v56, %v3780_v60 }
 0x319   :  { %v1831_v55 = vmul.f32 %v2381_v36, %v1815_v21  ;;  %v2383_v19 = vpop.eup %2382  ;;  %v907_v59 = vsel %vm3865_vm11, %v3667_v38, %v903_v41  ;;  %vm1444_vm12 = vcmp.eq.f32.partialorder %v1443_v13, 8.507059e+37  ;;  %v911_v31 = vor.u32 1.1754944e-38, %v910_v18 }
 0x31a   :  { %2386 = vtanh.f32 %v1784_v25  ;;  %v1475_v6 = vand.u32 2147483648, %v3633_v40  ;;  %v1447_v22 = vsel %vm1444_vm12, %v3537_v37, %v1442_v11  ;;  %vm909_vm13 = vcmp.eq.f32.partialorder %v908_v61, 8.507059e+37 }
 0x31b   :  { %2388 = vpow2.f32 %v2113_v10  ;;  %v1863_v8 = vadd.f32 %v1847_v27, %v1831_v55  ;;  %v1745_v62 = vpop.f32.mrf.mxu3  ;;  %v3879_v38 = vadd.f32 1.0, %v2383_v19  ;;  %v912_v48 = vsel %vm909_vm13, %v911_v31, %v907_v59 }
 0x31c   :  { %v1746_v52 = vadd.f32 %v3233_v2, %v1745_v62  ;;  %2390 = vrcp.f32 %v3851_v14  ;;  %v1453_v0 = vadd.f32 %v3603_v24, %v3685_v30  ;;  %v918_v58 = vadd.f32 %v3767_v45, %v917_v9 }
 0x31d   :  { %1879 = vst [vmem:[%s4094_s14 + $0x48] sm:$0xff] %v1863_v8  ;;  %vm920_vm14 = vweird.f32 %v3767_v45  ;;  %v931_v37 = vsub.f32 1.0, %v930_v26  ;;  %v3888_v47 = vpop.eup %2384  ;;  %v1467_v2 = vmul.f32 %v3704_v63, %v1466_v57  ;;  %vm1469_vm15 = vweird.f32 %v3633_v40 }
 0x31e   :  { %v1769_v29 = vmul.f32 %v1746_v52, %v912_v48  ;;  %v1816_v1 = vsub.f32 1.0, %v1447_v22  ;;  %v1458_v16 = vand.u32 2147483647, %v3525_v32  ;;  %v925_v39 = vand.u32 2147483648, %v3699_v49  ;;  %v2415_v32 = vld [vmem:[%s4083_s2 + $0x50] sm:$0xff] }
 0x31f   :  { %v1480_v43 = vmul.f32 %v3822_v12, %v3730_v4  ;;  %vm919_vm1 = vweird.f32 %v3699_v49  ;;  %v923_v46 = vand.u32 2147483647, %v3699_v49  ;;  %2392 = vrcp.f32 %v3879_v38 }
 0x320   :  { %v2387_v44 = vpop.eup %2386  ;;  %v1785_v20 = vadd.f32 %v1769_v29, %v3523_v7  ;;  %v1848_v53 = vmul.f32 %v2415_v32, %v1447_v22  ;;  %v1457_v50 = vsel %vm3898_vm0, %v3603_v24, %v1453_v0  ;;  %vm3916_vm2 = vmor %vm919_vm1, %vm920_vm14  ;;  %v932_v57 = vmul.f32 %v3838_v56, %v931_v37 }
 0x321   :  { %v2389_v42 = vpop.eup %2388  ;;  %v1832_v23 = vmul.f32 %v2387_v44, %v1816_v1  ;;  %v922_v49 = vsel %vm3916_vm2, %v3767_v45, %v918_v58  ;;  %v945_v51 = vmul.f32 %v3888_v47, %v3829_v54  ;;  %v1476_v33 = vor.u32 1.1754944e-38, %v1475_v6  ;;  %v3934_v45 = vld [vmem:[%s4093_s13] ss:$0 sm:$0xff]  ;;  %v2417_v6 = vld [vmem:[%s4083_s2 + $0x58] sm:$0xff] }
 0x322   :  { %2394 = vtanh.f32 %v1785_v20  ;;  %v3926_v35 = vpop.eup %2390  ;;  %vm1459_vm3 = vcmp.eq.f32.partialorder %v1458_v16, 8.507059e+37  ;;  %v926_v41 = vor.u32 1.1754944e-38, %v925_v39  ;;  %v3928_v10 = vadd.f32 1.0, %v2389_v42 }
 0x323   :  { %v1864_v24 = vadd.f32 %v1848_v53, %v1832_v23  ;;  %v1748_v5 = vpop.f32.mrf.mxu3  ;;  %v1462_v21 = vsel %vm1459_vm3, %v3572_v28, %v1457_v50  ;;  %vm924_vm4 = vcmp.eq.f32.partialorder %v923_v46, 8.507059e+37  ;;  %vm1470_vm5 = vweird.f32 %v3704_v63 }
 0x324   :  { %v1749_v13 = vadd.f32 %v3934_v45, %v1748_v5  ;;  %v1481_v18 = vsub.f32 1.0, %v1480_v43  ;;  %v927_v36 = vsel %vm924_vm4, %v926_v41, %v922_v49  ;;  %v1468_v34 = vadd.f32 %v3704_v63, %v1467_v2  ;;  %vm3954_vm7 = vmor %vm1469_vm15, %vm1470_vm5 }
 0x325   :  { %1880 = vst [vmem:[%s4094_s14 + $0x50] sm:$0xff] %v1864_v24  ;;  %v933_v28 = vadd.f32 %v3838_v56, %v932_v57  ;;  %vm935_vm6 = vweird.f32 %v3838_v56  ;;  %v946_v61 = vsub.f32 1.0, %v945_v51  ;;  %v3944_v55 = vpop.eup %2392  ;;  %v1495_v27 = vmul.f32 %v3926_v35, %v3851_v14  ;;  %v1636_v51 = vpop.f32.mrf.mxu2  ;;  %v2419_v24 = vld [vmem:[%s4083_s2 + $0x60] sm:$0xff] }
 0x326   :  { %v1770_v25 = vmul.f32 %v1749_v13, %v927_v36  ;;  %v1817_v11 = vsub.f32 1.0, %v1462_v21  ;;  %v1473_v15 = vand.u32 2147483647, %v3633_v40  ;;  %v940_v19 = vand.u32 2147483648, %v3780_v60 }
 0x327   :  { %2396 = vrcp.f32 %v3928_v10  ;;  %vm934_vm8 = vweird.f32 %v3780_v60  ;;  %v938_v8 = vand.u32 2147483647, %v3780_v60  ;;  %v1482_v31 = vmul.f32 %v3822_v12, %v1481_v18 }
 0x328   :  { %v2395_v59 = vpop.eup %2394  ;;  %v1786_v26 = vadd.f32 %v1770_v25, %v3575_v17  ;;  %v1849_v40 = vmul.f32 %v2417_v6, %v1462_v21  ;;  %v1472_v22 = vsel %vm3954_vm7, %v3704_v63, %v1468_v34  ;;  %vm3971_vm9 = vmor %vm934_vm8, %vm935_vm6  ;;  %v947_v52 = vmul.f32 %v3888_v47, %v946_v61  ;;  %v3984_v63 = vld [vmem:[%s4091_s12] ss:$0 sm:$0xff]  ;;  %v2420_v17 = vld [vmem:[%s4083_s2 + $0x68] sm:$0xff] }
 0x329   :  { %v1833_v62 = vmul.f32 %v2395_v59, %v1817_v11  ;;  %v937_v60 = vsel %vm3971_vm9, %v3838_v56, %v933_v28  ;;  %v960_v48 = vmul.f32 %v3944_v55, %v3879_v38  ;;  %v1634_v0 = vadd.f32 %v3984_v63, %v1633_v3 }
 0x32a   :  { %2398 = vtanh.f32 %v1786_v26  ;;  %vm1474_vm10 = vcmp.eq.f32.partialorder %v1473_v15, 8.507059e+37  ;;  %v941_v58 = vor.u32 1.1754944e-38, %v940_v19  ;;  %v1496_v2 = vsub.f32 1.0, %v1495_v27 }
 0x32b   :  { %v1865_v29 = vadd.f32 %v1849_v40, %v1833_v62  ;;  %v1750_v37 = vpop.f32.mrf.mxu3  ;;  %v1477_v1 = vsel %vm1474_vm10, %v1476_v33, %v1472_v22  ;;  %vm939_vm11 = vcmp.eq.f32.partialorder %v938_v8, 8.507059e+37  ;;  %vm1485_vm12 = vweird.f32 %v3822_v12 }
 0x32c   :  { %v1751_v56 = vadd.f32 %v3934_v45, %v1750_v37  ;;  %v1490_v16 = vand.u32 2147483648, %v3730_v4  ;;  %v942_v39 = vsel %vm939_vm11, %v941_v58, %v937_v60  ;;  %v1483_v44 = vadd.f32 %v3822_v12, %v1482_v31 }
 0x32d   :  { %1881 = vst [vmem:[%s4094_s14 + $0x58] sm:$0xff] %v1865_v29  ;;  %v3994_v30 = vpop.eup %2396  ;;  %v948_v20 = vadd.f32 %v3888_v47, %v947_v52  ;;  %vm950_vm13 = vweird.f32 %v3888_v47  ;;  %v961_v46 = vsub.f32 1.0, %v960_v48  ;;  %vm1484_vm14 = vweird.f32 %v3730_v4 }
 0x32e   :  { %v1771_v43 = vmul.f32 %v1751_v56, %v942_v39  ;;  %v1818_v42 = vsub.f32 1.0, %v1477_v1  ;;  %v1488_v23 = vand.u32 2147483647, %v3730_v4  ;;  %v955_v32 = vand.u32 2147483648, %v3829_v54  ;;  %vm4003_vm15 = vmor %vm1484_vm14, %vm1485_vm12 }
 0x32f   :  { %v1497_v7 = vmul.f32 %v3926_v35, %v1496_v2  ;;  %vm949_vm0 = vweird.f32 %v3829_v54  ;;  %v953_v57 = vand.u32 2147483647, %v3829_v54  ;;  %v1510_v4 = vmul.f32 %v3994_v30, %v3928_v10 }
 0x330   :  { %v2399_v53 = vpop.eup %2398  ;;  %v1787_v49 = vadd.f32 %v1771_v43, %v1634_v0  ;;  %v1850_v41 = vmul.f32 %v2419_v24, %v1477_v1  ;;  %v1487_v5 = vsel %vm4003_vm15, %v3822_v12, %v1483_v44  ;;  %vm4020_vm1 = vmor %vm949_vm0, %vm950_vm13  ;;  %v1491_v54 = vor.u32 1.1754944e-38, %v1490_v16 }
 0x331   :  { %v1834_v33 = vmul.f32 %v2399_v53, %v1818_v42  ;;  %v952_v13 = vsel %vm4020_vm1, %v3888_v47, %v948_v20  ;;  %v962_v18 = vmul.f32 %v3944_v55, %v961_v46  ;;  %vm1489_vm2 = vcmp.eq.f32.partialorder %v1488_v23, 8.507059e+37  ;;  %v2421_v46 = vld [vmem:[%s4083_s2 + $0x70] sm:$0xff] }
 0x332   :  { %2400 = vtanh.f32 %v1787_v49  ;;  %v956_v34 = vor.u32 1.1754944e-38, %v955_v32  ;;  %v1637_v12 = vadd.f32 %v3984_v63, %v1636_v51  ;;  %v1492_v28 = vsel %vm1489_vm2, %v1491_v54, %v1487_v5  ;;  %v2422_v49 = vld [vmem:[%s4083_s2 + $0x78] sm:$0xff] }
 0x333   :  { %v1866_v36 = vadd.f32 %v1850_v41, %v1834_v33  ;;  %v1753_v25 = vpop.f32.mrf.mxu3  ;;  %vm954_vm3 = vcmp.eq.f32.partialorder %v953_v57, 8.507059e+37  ;;  %vm1500_vm4 = vweird.f32 %v3926_v35  ;;  %v1511_v3 = vsub.f32 1.0, %v1510_v4 }
 0x334   :  { %v1754_v61 = vadd.f32 %v3934_v45, %v1753_v25  ;;  %v957_v47 = vsel %vm954_vm3, %v956_v34, %v952_v13  ;;  %v1498_v27 = vadd.f32 %v3926_v35, %v1497_v7  ;;  %v1505_v11 = vand.u32 2147483648, %v3851_v14 }
 0x335   :  { %1882 = vst [vmem:[%s4094_s14 + $0x60] sm:$0xff] %v1866_v36  ;;  %v963_v19 = vadd.f32 %v3944_v55, %v962_v18  ;;  %vm965_vm5 = vweird.f32 %v3944_v55  ;;  %vm1499_vm6 = vweird.f32 %v3851_v14  ;;  %v1819_v59 = vsub.f32 1.0, %v1492_v28 }
 0x336   :  { %v1772_v15 = vmul.f32 %v1754_v61, %v957_v47  ;;  %v1503_v9 = vand.u32 2147483647, %v3851_v14  ;;  %v970_v26 = vand.u32 2147483648, %v3879_v38  ;;  %vm4041_vm7 = vmor %vm1499_vm6, %vm1500_vm4  ;;  %vm964_vm8 = vweird.f32 %v3879_v38 }
 0x337   :  { %v968_v6 = vand.u32 2147483647, %v3879_v38  ;;  %v1512_v40 = vmul.f32 %v3994_v30, %v1511_v3  ;;  %v1851_v14 = vmul.f32 %v2420_v17, %v1492_v28  ;;  %v1502_v60 = vsel %vm4041_vm7, %v3926_v35, %v1498_v27  ;;  %vm966_vm9 = vmor %vm964_vm8, %vm965_vm5  ;;  %v1638_v38 = vpop.f32.mrf.mxu2 }
 0x338   :  { %v2401_v8 = vpop.eup %2400  ;;  %v1788_v62 = vadd.f32 %v1772_v15, %v1637_v12  ;;  %v1506_v52 = vor.u32 1.1754944e-38, %v1505_v11  ;;  %v967_v48 = vsel %vm966_vm9, %v3944_v55, %v963_v19  ;;  %vm1504_vm10 = vcmp.eq.f32.partialorder %v1503_v9, 8.507059e+37 }
 0x339   :  { %v1835_v22 = vmul.f32 %v2401_v8, %v1819_v59  ;;  %v971_v29 = vor.u32 1.1754944e-38, %v970_v26  ;;  %vm969_vm11 = vcmp.eq.f32.partialorder %v968_v6, 8.507059e+37  ;;  %vm1515_vm12 = vweird.f32 %v3994_v30 }
 0x33a   :  { %2402 = vtanh.f32 %v1788_v62  ;;  %v1507_v37 = vsel %vm1504_vm10, %v1506_v52, %v1502_v60  ;;  %v1513_v1 = vadd.f32 %v3994_v30, %v1512_v40  ;;  %v1520_v55 = vand.u32 2147483648, %v3928_v10 }
 0x33b   :  { %v1867_v0 = vadd.f32 %v1851_v14, %v1835_v22  ;;  %v1755_v58 = vpop.f32.mrf.mxu3  ;;  %v972_v35 = vsel %vm969_vm11, %v971_v29, %v967_v48  ;;  %v1639_v56 = vadd.f32 %v3984_v63, %v1638_v38  ;;  %vm1514_vm13 = vweird.f32 %v3928_v10 }
 0x33c   :  { %v1756_v2 = vadd.f32 %v3934_v45, %v1755_v58  ;;  %v1820_v39 = vsub.f32 1.0, %v1507_v37  ;;  %v1518_v44 = vand.u32 2147483647, %v3928_v10  ;;  %vm1516_vm14 = vmor %vm1514_vm13, %vm1515_vm12  ;;  %v1852_v42 = vmul.f32 %v2421_v46, %v1507_v37 }
 0x33d   :  { %1883 = vst [vmem:[%s4094_s14 + $0x68] sm:$0xff] %v1867_v0  ;;  %v1517_v23 = vsel %vm1516_vm14, %v3994_v30, %v1513_v1  ;;  %v1521_v32 = vor.u32 1.1754944e-38, %v1520_v55 }
 0x33e   :  { %v1773_v16 = vmul.f32 %v1756_v2, %v972_v35  ;;  %vm1519_vm15 = vcmp.eq.f32.partialorder %v1518_v44, 8.507059e+37 }
 0x33f   :  { %v1522_v53 = vsel %vm1519_vm15, %v1521_v32, %v1517_v23 }
 0x340   :  { %v2403_v45 = vpop.eup %2402  ;;  %v1789_v43 = vadd.f32 %v1773_v16, %v1639_v56  ;;  %v1821_v10 = vsub.f32 1.0, %v1522_v53  ;;  %v1853_v57 = vmul.f32 %v2422_v49, %v1522_v53 }
 0x341   :  { %v1836_v20 = vmul.f32 %v2403_v45, %v1820_v39 }
 0x342   :  { %2404 = vtanh.f32 %v1789_v43 }
 0x343   :  { %v1868_v63 = vadd.f32 %v1852_v42, %v1836_v20 }
 0x345   :  { %1884 = vst [vmem:[%s4094_s14 + $0x70] sm:$0xff] %v1868_v63 }
 0x348   :  { %v2405_v50 = vpop.eup %2404 }
 0x349   :  { %v1837_v7 = vmul.f32 %v2405_v50, %v1821_v10 }
 0x34b   :  { %v1869_v51 = vadd.f32 %v1853_v57, %v1837_v7 }
 0x34d   :  { %1885 = vst [vmem:[%s4094_s14 + $0x78] sm:$0xff] %v1869_v51 }

</bundles_post_ra>
